<compile_context>
chip_gen: v6e
topology: v6e:2x2x1
jax: 0.10.0
libtpu: 0.0.40
codegen_flags: <defaults>
</compile_context>

<pallas_src>
import functools

import jax
import jax.numpy as jnp
from jax import lax
from jax.experimental import pallas as pl
from jax.experimental.pallas import tpu as pltpu


# Sub-pixel (phase) decomposition of ConvTranspose2d(kernel=4, stride=2, pad=1):
# output row 2*i + ph sums two taps a in {0,1}; tap a reads down-activation row
# i - 1 + _UP_START[ph][a]  (== dpad row i + _UP_START[ph][a]; dpad carries a
# zero border at index 0) with transposed-conv kernel tap kh = _UP_KIDX[ph][a].
_UP_START = ((0, 1), (1, 2))
_UP_KIDX = ((3, 1), (2, 0))


def _fused_down_up_kernel(xph_ref, wd_ref, wu_ref, u_ref, stat_ref, dpad):
    """LeakyReLU -> Conv2d(4,2,1) -> ReLU -> ConvTranspose2d(4,2,1) -> BN partials.

    xph_ref : [1, Ho+1, Wo+1, 4*Cin] phase-packed zero-padded input (one image)
    wd_ref  : [16*Cin, inner]        down weights, K order (dh, dw, ph, pw, cin)
    wu_ref  : [4, 4*inner, Co]       up weights, output-phase major, K = (a, b, ic)
    u_ref   : [Ho, 2, Wo, 2*Co]      pre-BN up activations (flat order == NHWC)
    stat_ref: [1, 2, Co]             per-image [sum, sum_of_squares] (f32)
    dpad    : VMEM [Ho+2, Wo+2, inner] ReLU'd down activations + zero border
    """
    ho, _, wo, _ = u_ref.shape
    inner = dpad.shape[2]
    co = stat_ref.shape[2]
    m = ho * wo
    c4 = xph_ref.shape[-1]                      # 4 * Cin

    # ---- down path: LeakyReLU once, then ONE K = 16*Cin matmul --------------
    xl = xph_ref[0]                             # [Ho+1, Wo+1, 4*Cin]
    xl = jnp.where(xl > 0, xl, 0.2 * xl)        # LeakyReLU(0.2), single pass
    slabs = []
    for dh in range(2):
        for dw in range(2):
            slabs.append(xl[dh:dh + ho, dw:dw + wo, :].reshape(m, c4))
    patch = jnp.concatenate(slabs, axis=1)      # [M, 16*Cin]
    acc = jnp.dot(patch, wd_ref[...], preferred_element_type=jnp.float32)

    # ---- ReLU + zero border (the transposed conv's implicit padding) --------
    # Only the border is zeroed (interior is fully overwritten each step).
    zrow = jnp.zeros((1, wo + 2, inner), dpad.dtype)
    zcol = jnp.zeros((ho + 2, 1, inner), dpad.dtype)
    dpad[pl.ds(0, 1), :, :] = zrow
    dpad[pl.ds(ho + 1, 1), :, :] = zrow
    dpad[:, pl.ds(0, 1), :] = zcol
    dpad[:, pl.ds(wo + 1, 1), :] = zcol
    dpad[pl.ds(1, ho), pl.ds(1, wo), :] = (
        jnp.maximum(acc, 0.0).reshape(ho, wo, inner).astype(dpad.dtype))

    # ---- up path: per output phase ONE K = 4*inner matmul + BN partials -----
    s_sum = jnp.zeros((1, co), jnp.float32)
    s_sq = jnp.zeros((1, co), jnp.float32)
    for ph in range(2):
        cols = []
        for pw in range(2):
            pieces = []
            for a in range(2):
                for b in range(2):
                    pieces.append(
                        dpad[pl.ds(_UP_START[ph][a], ho),
                             pl.ds(_UP_START[pw][b], wo), :].reshape(m, inner))
            up_patch = jnp.concatenate(pieces, axis=1)      # [M, 4*inner]
            y = jnp.dot(up_patch, wu_ref[ph * 2 + pw],
                        preferred_element_type=jnp.float32)  # [M, Co], f32
            s_sum = s_sum + jnp.sum(y, axis=0, keepdims=True)
            s_sq = s_sq + jnp.sum(y * y, axis=0, keepdims=True)
            cols.append(y)
        # output lanes are (pw, c): a lane-concat, no transposes needed.
        row_slab = jnp.concatenate(cols, axis=1)            # [M, 2*Co]
        u_ref[:, pl.ds(ph, 1), :, :] = (
            row_slab.reshape(ho, 1, wo, 2 * co).astype(u_ref.dtype))

    # TODO(synk): E[x^2]-mean^2 in f32 can cancel for huge batches; switch to a
    # two-pass variance if that regime ever matters.
    stat_ref[:, pl.ds(0, 1), :] = s_sum.reshape(1, 1, co)
    stat_ref[:, pl.ds(1, 1), :] = s_sq.reshape(1, 1, co)


def _bn_apply_kernel(u_ref, scale_ref, shift_ref, o_ref):
    # y = u * scale + shift  (per-channel affine, lanes already laid out (pw, c))
    o_ref[...] = (u_ref[...].astype(jnp.float32) * scale_ref[...]
                  + shift_ref[...]).astype(o_ref.dtype)


def _pick_row_tile(m, cap=4096):
    """Whole array if it fits one block, else the largest pow2 divisor <= cap."""
    if m <= cap:
        return m
    t, best = 8, m
    while t <= cap:
        if m % t == 0:
            best = t
        t *= 2
    return best


def _vmem_limit_bytes():
    cap = 64 * 1024 * 1024
    try:
        info = pltpu.get_tpu_info()
        cap = int(getattr(info, "vmem_capacity_bytes", cap))
    except Exception:
        pass
    # ~60% of physical: ~77 MiB on v5e/v6e (128 MiB), ~38 MiB on v7x (64 MiB).
    return int(min(0.6 * cap, 100 * 1024 * 1024))


def unet_skip_connection_block(x, params, mask=None, compute_dtype=jnp.float32):
    """Innermost UnetSkipConnectionBlock forward.  x: [N, input_nc, H, W] (NCHW)."""
    w_down = params["w_down"]      # [inner_nc, input_nc, 4, 4]  Conv2d OIHW
    w_up = params["w_up"]          # [inner_nc, outer_nc, 4, 4]  ConvTranspose2d IOHW
    gamma = params["bn_gamma"]     # [outer_nc]
    beta = params["bn_beta"]       # [outer_nc]

    n, cin, h, w = x.shape
    assert h % 2 == 0 and w % 2 == 0, "spatial dims must be even"
    inner = w_down.shape[0]
    co = w_up.shape[1]
    ho, wo = h // 2, w // 2
    itemsize = jnp.dtype(compute_dtype).itemsize
    vmem_limit = _vmem_limit_bytes()

    # ---- input prep: NCHW->NHWC, pad 1, pack the 2x2 phases into the lanes --
    # (single fused XLA pass; xph[n, I, J, (py*2+px)*cin + c] = x_pad[n, 2I+py, 2J+px, c])
    xn = jnp.transpose(x, (0, 2, 3, 1)).astype(compute_dtype)
    xp = jnp.pad(xn, ((0, 0), (1, 1), (1, 1), (0, 0)))
    xph = xp.reshape(n, ho + 1, 2, wo + 1, 2, cin)
    xph = jnp.transpose(xph, (0, 1, 3, 2, 4, 5)).reshape(n, ho + 1, wo + 1, 4 * cin)

    # ---- weight prep: K-packed matmul operands -------------------------------
    # down: rows ordered (dh, dw, py, px, cin) to match the in-kernel patch.
    wd = jnp.transpose(w_down, (2, 3, 1, 0)).reshape(2, 2, 2, 2, cin, inner)
    wd_packed = jnp.transpose(wd, (0, 2, 1, 3, 4, 5)).reshape(16 * cin, inner)
    wd_packed = wd_packed.astype(compute_dtype)
    # up: one [4*inner, co] slab per output phase, rows ordered (a, b, ic).
    slabs = []
    for ph in range(2):
        for pw in range(2):
            rows = [w_up[:, :, _UP_KIDX[ph][a], _UP_KIDX[pw][b]]
                    for a in range(2) for b in range(2)]
            slabs.append(jnp.concatenate(rows, axis=0))
    wu_packed = jnp.stack(slabs, axis=0).astype(compute_dtype)   # [4, 4*inner, co]

    # ---- fused LeakyReLU -> conv -> ReLU -> convT -> BN-partials kernel -----
    m = ho * wo
    flops = 2 * n * m * 16 * inner * (cin + co)
    bytes_acc = int((xph.size + wd_packed.size + wu_packed.size) * itemsize
                    + n * h * w * co * itemsize + n * 2 * co * 4)
    u_pre, stats = pl.pallas_call(
        _fused_down_up_kernel,
        out_shape=(jax.ShapeDtypeStruct((n * ho, 2, wo, 2 * co), compute_dtype),
                   jax.ShapeDtypeStruct((n, 2, co), jnp.float32)),
        grid=(n,),
        in_specs=[
            pl.BlockSpec((1, ho + 1, wo + 1, 4 * cin), lambda i: (i, 0, 0, 0)),
            pl.BlockSpec((16 * cin, inner), lambda i: (0, 0)),
            pl.BlockSpec((4, 4 * inner, co), lambda i: (0, 0, 0)),
        ],
        out_specs=(
            pl.BlockSpec((ho, 2, wo, 2 * co), lambda i: (i, 0, 0, 0)),
            pl.BlockSpec((1, 2, co), lambda i: (i, 0, 0)),
        ),
        scratch_shapes=[pltpu.VMEM((ho + 2, wo + 2, inner), compute_dtype)],
        compiler_params=pltpu.CompilerParams(
            dimension_semantics=("parallel",),
            vmem_limit_bytes=vmem_limit),
        cost_estimate=pl.CostEstimate(flops=flops, transcendentals=0,
                                      bytes_accessed=bytes_acc),
    )(xph, wd_packed, wu_packed)

    # ---- BatchNorm2d batch statistics (train mode, biased variance) ---------
    tot = jnp.sum(stats, axis=0)                    # [2, co]
    denom = float(n * h * w)
    mean = tot[0] / denom
    var = tot[1] / denom - mean * mean
    scale = gamma.astype(jnp.float32) * lax.rsqrt(var + 1e-5)
    shift = beta.astype(jnp.float32) - mean * scale
    scale2 = jnp.tile(scale, 2).reshape(1, 2 * co)  # lanes are (pw, c)
    shift2 = jnp.tile(shift, 2).reshape(1, 2 * co)

    # ---- BN affine apply; stored layout already flattens to NHWC ------------
    rows = n * ho * 2 * wo
    tile_r = _pick_row_tile(rows)
    u_bn = pl.pallas_call(
        _bn_apply_kernel,
        out_shape=jax.ShapeDtypeStruct((rows, 2 * co), x.dtype),
        grid=(rows // tile_r,),
        in_specs=[
            pl.BlockSpec((tile_r, 2 * co), lambda i: (i, 0)),
            pl.BlockSpec((1, 2 * co), lambda i: (0, 0)),
            pl.BlockSpec((1, 2 * co), lambda i: (0, 0)),
        ],
        out_specs=pl.BlockSpec((tile_r, 2 * co), lambda i: (i, 0)),
        compiler_params=pltpu.CompilerParams(
            dimension_semantics=("parallel",),
            vmem_limit_bytes=vmem_limit),
    )(u_pre.reshape(rows, 2 * co), scale2, shift2)

    # ---- free reshape (flat order == NHWC), NCHW, skip-concat ---------------
    u_nhwc = u_bn.reshape(n, h, w, co)
    u_nchw = jnp.transpose(u_nhwc, (0, 3, 1, 2)).astype(x.dtype)
    # TODO(synk): outermost / middle / attention (RASC) variants of the block
    # are not instantiated here; this implements the innermost configuration.
    return jnp.concatenate([x, u_nchw], axis=1), mask


# ---------------------------------- reference --------------------------------

def _reference(x, params):
    w_down = params["w_down"]
    w_up_t = params["w_up"]
    gamma = params["bn_gamma"]
    beta = params["bn_beta"]

    lrelu = jnp.where(x > 0, x, 0.2 * x)
    d = lax.conv_general_dilated(lrelu, w_down, (2, 2), ((1, 1), (1, 1)),
                                 dimension_numbers=("NCHW", "OIHW", "NCHW"),
                                 precision=lax.Precision.HIGHEST)
    r = jnp.maximum(d, 0.0)
    w_eq = jnp.transpose(w_up_t, (1, 0, 2, 3))[:, :, ::-1, ::-1]
    u = lax.conv_general_dilated(r, w_eq, (1, 1), ((2, 2), (2, 2)),
                                 lhs_dilation=(2, 2),
                                 dimension_numbers=("NCHW", "OIHW", "NCHW"),
                                 precision=lax.Precision.HIGHEST)
    mean = u.mean(axis=(0, 2, 3), keepdims=True)
    var = ((u - mean) ** 2).mean(axis=(0, 2, 3), keepdims=True)
    u_bn = (u - mean) * lax.rsqrt(var + 1e-5) * gamma.reshape(1, -1, 1, 1) \
           + beta.reshape(1, -1, 1, 1)
    return jnp.concatenate([x, u_bn], axis=1)


# ------------------------------------ main ------------------------------------

if __name__ == "__main__":
    N, outer_nc, inner_nc, H, W = 2, 4, 8, 16, 16
    input_nc = outer_nc  # input_nc=None in __init__ -> input_nc = outer_nc

    key = jax.random.PRNGKey(0)
    k1, k2, kx = jax.random.split(key, 3)

    params = {
        # Conv2d(input_nc, inner_nc, 4, stride=2, pad=1), bias=False (BN norm layer)
        "w_down": 0.1 * jax.random.normal(k1, (inner_nc, input_nc, 4, 4), jnp.float32),
        # ConvTranspose2d(inner_nc, outer_nc, 4, stride=2, pad=1), bias=False
        "w_up": 0.1 * jax.random.normal(k2, (inner_nc, outer_nc, 4, 4), jnp.float32),
        # BatchNorm2d(outer_nc) affine params (nontrivial values)
        "bn_gamma": 1.0 + 0.1 * jnp.arange(outer_nc, dtype=jnp.float32),
        "bn_beta": 0.01 * jnp.arange(outer_nc, dtype=jnp.float32),
    }

    x = jax.random.normal(kx, (N, input_nc, H, W), jnp.float32)

    fwd = jax.jit(functools.partial(unet_skip_connection_block, params=params))
    out, mask = fwd(x)
    out = jax.block_until_ready(out)

    ref = _reference(x, params)
    assert out.shape == (N, 2 * outer_nc, H, W), out.shape
    err = float(jnp.max(jnp.abs(out - ref)))
    assert jnp.allclose(out, ref, rtol=1e-4, atol=1e-4), err

    print("KERNEL_OK")
</pallas_src>

<mosaic_0001>
module attributes {stable_mosaic.version = 11 : i64} {
  func.func @_fused_down_up_kernel(%arg0: i32, %arg1: memref<1x9x9x16xf32, #tpu.memory_space<vmem>>, %arg2: memref<64x8xf32, #tpu.memory_space<vmem>>, %arg3: memref<4x32x4xf32, #tpu.memory_space<vmem>>, %arg4: memref<8x2x8x8xf32, #tpu.memory_space<vmem>>, %arg5: memref<1x2x4xf32, #tpu.memory_space<vmem>>, %arg6: memref<10x10x8xf32, #tpu.memory_space<vmem>>) attributes {dimension_semantics = [#tpu.dimension_semantics<parallel>], iteration_bounds = array<i64: 2>, scalar_prefetch = 0 : i64, scratch_operands = 1 : i64, tpu.core_type = #tpu.core_type<tc>, window_params = [{transform_indices = @transform_0, window_bounds = array<i64: 1, 9, 9, 16>}, {pipeline_mode = #tpu.pipeline_mode<synchronous>, transform_indices = @transform_1, window_bounds = array<i64: 64, 8>}, {pipeline_mode = #tpu.pipeline_mode<synchronous>, transform_indices = @transform_2, window_bounds = array<i64: 4, 32, 4>}, {transform_indices = @transform_3, window_bounds = array<i64: 8, 2, 8, 8>}, {transform_indices = @transform_4, window_bounds = array<i64: 1, 2, 4>}]} {
    %c0 = arith.constant 0 : index
    %c0_0 = arith.constant 0 : index
    %c0_1 = arith.constant 0 : index
    %c0_2 = arith.constant 0 : index
    %0 = vector.load %arg1[%c0, %c0_0, %c0_1, %c0_2] : memref<1x9x9x16xf32, #tpu.memory_space<vmem>>, vector<1x9x9x16xf32>
    %1 = vector.shape_cast %0 : vector<1x9x9x16xf32> to vector<9x9x16xf32>
    %cst = arith.constant 0.000000e+00 : f32
    %2 = vector.broadcast %cst : f32 to vector<9x9x16xf32>
    %3 = arith.cmpf ogt, %1, %2 : vector<9x9x16xf32>
    %cst_3 = arith.constant 2.000000e-01 : f32
    %4 = vector.broadcast %cst_3 : f32 to vector<9x9x16xf32>
    %5 = arith.mulf %4, %1 : vector<9x9x16xf32>
    %6 = arith.select %3, %1, %5 : vector<9x9x16xi1>, vector<9x9x16xf32>
    %7 = vector.extract_strided_slice %6 {offsets = [0, 0, 0], sizes = [8, 8, 16], strides = [1, 1, 1]} : vector<9x9x16xf32> to vector<8x8x16xf32>
    %8 = vector.shape_cast %7 : vector<8x8x16xf32> to vector<64x16xf32>
    %9 = vector.extract_strided_slice %6 {offsets = [0, 1, 0], sizes = [8, 8, 16], strides = [1, 1, 1]} : vector<9x9x16xf32> to vector<8x8x16xf32>
    %10 = vector.shape_cast %9 : vector<8x8x16xf32> to vector<64x16xf32>
    %11 = vector.extract_strided_slice %6 {offsets = [1, 0, 0], sizes = [8, 8, 16], strides = [1, 1, 1]} : vector<9x9x16xf32> to vector<8x8x16xf32>
    %12 = vector.shape_cast %11 : vector<8x8x16xf32> to vector<64x16xf32>
    %13 = vector.extract_strided_slice %6 {offsets = [1, 1, 0], sizes = [8, 8, 16], strides = [1, 1, 1]} : vector<9x9x16xf32> to vector<8x8x16xf32>
    %14 = vector.shape_cast %13 : vector<8x8x16xf32> to vector<64x16xf32>
    %15 = tpu.concatenate %8, %10, %12, %14 in 1 : vector<64x16xf32>, vector<64x16xf32>, vector<64x16xf32>, vector<64x16xf32> -> vector<64x64xf32>
    %c0_4 = arith.constant 0 : index
    %c0_5 = arith.constant 0 : index
    %16 = vector.load %arg2[%c0_4, %c0_5] : memref<64x8xf32, #tpu.memory_space<vmem>>, vector<64x8xf32>
    %cst_6 = arith.constant dense<0.000000e+00> : vector<64x8xf32>
    %17 = tpu.matmul %15, %16, %cst_6 {dimension_numbers = #tpu.dot_dimension_numbers<[1], [0], [0], [1], [0, 0, 1, 1], [], []>} : vector<64x64xf32>, vector<64x8xf32>, vector<64x8xf32> -> vector<64x8xf32>
    %cst_7 = arith.constant 0.000000e+00 : f32
    %18 = vector.broadcast %cst_7 : f32 to vector<1x10x8xf32>
    %cst_8 = arith.constant 0.000000e+00 : f32
    %19 = vector.broadcast %cst_8 : f32 to vector<10x1x8xf32>
    %c0_9 = arith.constant 0 : index
    %c0_10 = arith.constant 0 : index
    %c0_11 = arith.constant 0 : index
    %20 = vector.load %arg6[%c0_9, %c0_10, %c0_11] : memref<10x10x8xf32, #tpu.memory_space<vmem>>, vector<1x10x8xf32>
    tpu.vector_store %arg6[%c0_9, %c0_10, %c0_11], %18 {strides = array<i32>} : memref<10x10x8xf32, #tpu.memory_space<vmem>>, vector<1x10x8xf32>,
    %c9 = arith.constant 9 : index
    %c0_12 = arith.constant 0 : index
    %c0_13 = arith.constant 0 : index
    %21 = vector.load %arg6[%c9, %c0_12, %c0_13] : memref<10x10x8xf32, #tpu.memory_space<vmem>>, vector<1x10x8xf32>
    tpu.vector_store %arg6[%c9, %c0_12, %c0_13], %18 {strides = array<i32>} : memref<10x10x8xf32, #tpu.memory_space<vmem>>, vector<1x10x8xf32>,
    %c0_14 = arith.constant 0 : index
    %c0_15 = arith.constant 0 : index
    %c0_16 = arith.constant 0 : index
    %22 = vector.load %arg6[%c0_14, %c0_15, %c0_16] : memref<10x10x8xf32, #tpu.memory_space<vmem>>, vector<10x1x8xf32>
    tpu.vector_store %arg6[%c0_14, %c0_15, %c0_16], %19 {strides = array<i32>} : memref<10x10x8xf32, #tpu.memory_space<vmem>>, vector<10x1x8xf32>,
    %c0_17 = arith.constant 0 : index
    %c9_18 = arith.constant 9 : index
    %c0_19 = arith.constant 0 : index
    %23 = vector.load %arg6[%c0_17, %c9_18, %c0_19] : memref<10x10x8xf32, #tpu.memory_space<vmem>>, vector<10x1x8xf32>
    tpu.vector_store %arg6[%c0_17, %c9_18, %c0_19], %19 {strides = array<i32>} : memref<10x10x8xf32, #tpu.memory_space<vmem>>, vector<10x1x8xf32>,
    %cst_20 = arith.constant 0.000000e+00 : f32
    %24 = vector.broadcast %cst_20 : f32 to vector<64x8xf32>
    %25 = arith.maximumf %17, %24 : vector<64x8xf32>
    %26 = vector.shape_cast %25 : vector<64x8xf32> to vector<8x8x8xf32>
    %c1 = arith.constant 1 : index
    %c1_21 = arith.constant 1 : index
    %c0_22 = arith.constant 0 : index
    %27 = vector.load %arg6[%c1, %c1_21, %c0_22] : memref<10x10x8xf32, #tpu.memory_space<vmem>>, vector<8x8x8xf32>
    tpu.vector_store %arg6[%c1, %c1_21, %c0_22], %26 {strides = array<i32>} : memref<10x10x8xf32, #tpu.memory_space<vmem>>, vector<8x8x8xf32>,
    %cst_23 = arith.constant 0.000000e+00 : f32
    %28 = vector.broadcast %cst_23 : f32 to vector<1x4xf32>
    %cst_24 = arith.constant 0.000000e+00 : f32
    %29 = vector.broadcast %cst_24 : f32 to vector<1x4xf32>
    %c0_25 = arith.constant 0 : index
    %c0_26 = arith.constant 0 : index
    %c0_27 = arith.constant 0 : index
    %30 = vector.load %arg6[%c0_25, %c0_26, %c0_27] : memref<10x10x8xf32, #tpu.memory_space<vmem>>, vector<8x8x8xf32>
    %31 = vector.shape_cast %30 : vector<8x8x8xf32> to vector<64x8xf32>
    %c0_28 = arith.constant 0 : index
    %c1_29 = arith.constant 1 : index
    %c0_30 = arith.constant 0 : index
    %32 = vector.load %arg6[%c0_28, %c1_29, %c0_30] : memref<10x10x8xf32, #tpu.memory_space<vmem>>, vector<8x8x8xf32>
    %33 = vector.shape_cast %32 : vector<8x8x8xf32> to vector<64x8xf32>
    %c1_31 = arith.constant 1 : index
    %c0_32 = arith.constant 0 : index
    %c0_33 = arith.constant 0 : index
    %34 = vector.load %arg6[%c1_31, %c0_32, %c0_33] : memref<10x10x8xf32, #tpu.memory_space<vmem>>, vector<8x8x8xf32>
    %35 = vector.shape_cast %34 : vector<8x8x8xf32> to vector<64x8xf32>
    %c1_34 = arith.constant 1 : index
    %c1_35 = arith.constant 1 : index
    %c0_36 = arith.constant 0 : index
    %36 = vector.load %arg6[%c1_34, %c1_35, %c0_36] : memref<10x10x8xf32, #tpu.memory_space<vmem>>, vector<8x8x8xf32>
    %37 = vector.shape_cast %36 : vector<8x8x8xf32> to vector<64x8xf32>
    %38 = tpu.concatenate %31, %33, %35, %37 in 1 : vector<64x8xf32>, vector<64x8xf32>, vector<64x8xf32>, vector<64x8xf32> -> vector<64x32xf32>
    %c0_37 = arith.constant 0 : index
    %c0_38 = arith.constant 0 : index
    %c0_39 = arith.constant 0 : index
    %39 = vector.load %arg3[%c0_37, %c0_38, %c0_39] : memref<4x32x4xf32, #tpu.memory_space<vmem>>, vector<1x32x4xf32>
    %40 = vector.shape_cast %39 : vector<1x32x4xf32> to vector<32x4xf32>
    %cst_40 = arith.constant dense<0.000000e+00> : vector<64x4xf32>
    %41 = tpu.matmul %38, %40, %cst_40 {dimension_numbers = #tpu.dot_dimension_numbers<[1], [0], [0], [1], [0, 0, 1, 1], [], []>} : vector<64x32xf32>, vector<32x4xf32>, vector<64x4xf32> -> vector<64x4xf32>
    %cst_41 = arith.constant dense<0.000000e+00> : vector<4xf32>
    %42 = vector.multi_reduction <add>, %41, %cst_41 [0] : vector<64x4xf32> to vector<4xf32>
    %43 = vector.shape_cast %42 : vector<4xf32> to vector<1x4xf32>
    %44 = arith.addf %28, %43 : vector<1x4xf32>
    %45 = arith.mulf %41, %41 : vector<64x4xf32>
    %cst_42 = arith.constant dense<0.000000e+00> : vector<4xf32>
    %46 = vector.multi_reduction <add>, %45, %cst_42 [0] : vector<64x4xf32> to vector<4xf32>
    %47 = vector.shape_cast %46 : vector<4xf32> to vector<1x4xf32>
    %48 = arith.addf %29, %47 : vector<1x4xf32>
    %c0_43 = arith.constant 0 : index
    %c1_44 = arith.constant 1 : index
    %c0_45 = arith.constant 0 : index
    %49 = vector.load %arg6[%c0_43, %c1_44, %c0_45] : memref<10x10x8xf32, #tpu.memory_space<vmem>>, vector<8x8x8xf32>
    %50 = vector.shape_cast %49 : vector<8x8x8xf32> to vector<64x8xf32>
    %c0_46 = arith.constant 0 : index
    %c2 = arith.constant 2 : index
    %c0_47 = arith.constant 0 : index
    %51 = vector.load %arg6[%c0_46, %c2, %c0_47] : memref<10x10x8xf32, #tpu.memory_space<vmem>>, vector<8x8x8xf32>
    %52 = vector.shape_cast %51 : vector<8x8x8xf32> to vector<64x8xf32>
    %c1_48 = arith.constant 1 : index
    %c1_49 = arith.constant 1 : index
    %c0_50 = arith.constant 0 : index
    %53 = vector.load %arg6[%c1_48, %c1_49, %c0_50] : memref<10x10x8xf32, #tpu.memory_space<vmem>>, vector<8x8x8xf32>
    %54 = vector.shape_cast %53 : vector<8x8x8xf32> to vector<64x8xf32>
    %c1_51 = arith.constant 1 : index
    %c2_52 = arith.constant 2 : index
    %c0_53 = arith.constant 0 : index
    %55 = vector.load %arg6[%c1_51, %c2_52, %c0_53] : memref<10x10x8xf32, #tpu.memory_space<vmem>>, vector<8x8x8xf32>
    %56 = vector.shape_cast %55 : vector<8x8x8xf32> to vector<64x8xf32>
    %57 = tpu.concatenate %50, %52, %54, %56 in 1 : vector<64x8xf32>, vector<64x8xf32>, vector<64x8xf32>, vector<64x8xf32> -> vector<64x32xf32>
    %c1_54 = arith.constant 1 : index
    %c0_55 = arith.constant 0 : index
    %c0_56 = arith.constant 0 : index
    %58 = vector.load %arg3[%c1_54, %c0_55, %c0_56] : memref<4x32x4xf32, #tpu.memory_space<vmem>>, vector<1x32x4xf32>
    %59 = vector.shape_cast %58 : vector<1x32x4xf32> to vector<32x4xf32>
    %cst_57 = arith.constant dense<0.000000e+00> : vector<64x4xf32>
    %60 = tpu.matmul %57, %59, %cst_57 {dimension_numbers = #tpu.dot_dimension_numbers<[1], [0], [0], [1], [0, 0, 1, 1], [], []>} : vector<64x32xf32>, vector<32x4xf32>, vector<64x4xf32> -> vector<64x4xf32>
    %cst_58 = arith.constant dense<0.000000e+00> : vector<4xf32>
    %61 = vector.multi_reduction <add>, %60, %cst_58 [0] : vector<64x4xf32> to vector<4xf32>
    %62 = vector.shape_cast %61 : vector<4xf32> to vector<1x4xf32>
    %63 = arith.addf %44, %62 : vector<1x4xf32>
    %64 = arith.mulf %60, %60 : vector<64x4xf32>
    %cst_59 = arith.constant dense<0.000000e+00> : vector<4xf32>
    %65 = vector.multi_reduction <add>, %64, %cst_59 [0] : vector<64x4xf32> to vector<4xf32>
    %66 = vector.shape_cast %65 : vector<4xf32> to vector<1x4xf32>
    %67 = arith.addf %48, %66 : vector<1x4xf32>
    %68 = tpu.concatenate %41, %60 in 1 : vector<64x4xf32>, vector<64x4xf32> -> vector<64x8xf32>
    %69 = vector.shape_cast %68 : vector<64x8xf32> to vector<8x1x8x8xf32>
    %c0_60 = arith.constant 0 : index
    %c0_61 = arith.constant 0 : index
    %c0_62 = arith.constant 0 : index
    %c0_63 = arith.constant 0 : index
    %70 = vector.load %arg4[%c0_60, %c0_61, %c0_62, %c0_63] : memref<8x2x8x8xf32, #tpu.memory_space<vmem>>, vector<8x1x8x8xf32>
    tpu.vector_store %arg4[%c0_60, %c0_61, %c0_62, %c0_63], %69 {strides = array<i32>} : memref<8x2x8x8xf32, #tpu.memory_space<vmem>>, vector<8x1x8x8xf32>,
    %c1_64 = arith.constant 1 : index
    %c0_65 = arith.constant 0 : index
    %c0_66 = arith.constant 0 : index
    %71 = vector.load %arg6[%c1_64, %c0_65, %c0_66] : memref<10x10x8xf32, #tpu.memory_space<vmem>>, vector<8x8x8xf32>
    %72 = vector.shape_cast %71 : vector<8x8x8xf32> to vector<64x8xf32>
    %c1_67 = arith.constant 1 : index
    %c1_68 = arith.constant 1 : index
    %c0_69 = arith.constant 0 : index
    %73 = vector.load %arg6[%c1_67, %c1_68, %c0_69] : memref<10x10x8xf32, #tpu.memory_space<vmem>>, vector<8x8x8xf32>
    %74 = vector.shape_cast %73 : vector<8x8x8xf32> to vector<64x8xf32>
    %c2_70 = arith.constant 2 : index
    %c0_71 = arith.constant 0 : index
    %c0_72 = arith.constant 0 : index
    %75 = vector.load %arg6[%c2_70, %c0_71, %c0_72] : memref<10x10x8xf32, #tpu.memory_space<vmem>>, vector<8x8x8xf32>
    %76 = vector.shape_cast %75 : vector<8x8x8xf32> to vector<64x8xf32>
    %c2_73 = arith.constant 2 : index
    %c1_74 = arith.constant 1 : index
    %c0_75 = arith.constant 0 : index
    %77 = vector.load %arg6[%c2_73, %c1_74, %c0_75] : memref<10x10x8xf32, #tpu.memory_space<vmem>>, vector<8x8x8xf32>
    %78 = vector.shape_cast %77 : vector<8x8x8xf32> to vector<64x8xf32>
    %79 = tpu.concatenate %72, %74, %76, %78 in 1 : vector<64x8xf32>, vector<64x8xf32>, vector<64x8xf32>, vector<64x8xf32> -> vector<64x32xf32>
    %c2_76 = arith.constant 2 : index
    %c0_77 = arith.constant 0 : index
    %c0_78 = arith.constant 0 : index
    %80 = vector.load %arg3[%c2_76, %c0_77, %c0_78] : memref<4x32x4xf32, #tpu.memory_space<vmem>>, vector<1x32x4xf32>
    %81 = vector.shape_cast %80 : vector<1x32x4xf32> to vector<32x4xf32>
    %cst_79 = arith.constant dense<0.000000e+00> : vector<64x4xf32>
    %82 = tpu.matmul %79, %81, %cst_79 {dimension_numbers = #tpu.dot_dimension_numbers<[1], [0], [0], [1], [0, 0, 1, 1], [], []>} : vector<64x32xf32>, vector<32x4xf32>, vector<64x4xf32> -> vector<64x4xf32>
    %cst_80 = arith.constant dense<0.000000e+00> : vector<4xf32>
    %83 = vector.multi_reduction <add>, %82, %cst_80 [0] : vector<64x4xf32> to vector<4xf32>
    %84 = vector.shape_cast %83 : vector<4xf32> to vector<1x4xf32>
    %85 = arith.addf %63, %84 : vector<1x4xf32>
    %86 = arith.mulf %82, %82 : vector<64x4xf32>
    %cst_81 = arith.constant dense<0.000000e+00> : vector<4xf32>
    %87 = vector.multi_reduction <add>, %86, %cst_81 [0] : vector<64x4xf32> to vector<4xf32>
    %88 = vector.shape_cast %87 : vector<4xf32> to vector<1x4xf32>
    %89 = arith.addf %67, %88 : vector<1x4xf32>
    %c1_82 = arith.constant 1 : index
    %c1_83 = arith.constant 1 : index
    %c0_84 = arith.constant 0 : index
    %90 = vector.load %arg6[%c1_82, %c1_83, %c0_84] : memref<10x10x8xf32, #tpu.memory_space<vmem>>, vector<8x8x8xf32>
    %91 = vector.shape_cast %90 : vector<8x8x8xf32> to vector<64x8xf32>
    %c1_85 = arith.constant 1 : index
    %c2_86 = arith.constant 2 : index
    %c0_87 = arith.constant 0 : index
    %92 = vector.load %arg6[%c1_85, %c2_86, %c0_87] : memref<10x10x8xf32, #tpu.memory_space<vmem>>, vector<8x8x8xf32>
    %93 = vector.shape_cast %92 : vector<8x8x8xf32> to vector<64x8xf32>
    %c2_88 = arith.constant 2 : index
    %c1_89 = arith.constant 1 : index
    %c0_90 = arith.constant 0 : index
    %94 = vector.load %arg6[%c2_88, %c1_89, %c0_90] : memref<10x10x8xf32, #tpu.memory_space<vmem>>, vector<8x8x8xf32>
    %95 = vector.shape_cast %94 : vector<8x8x8xf32> to vector<64x8xf32>
    %c2_91 = arith.constant 2 : index
    %c2_92 = arith.constant 2 : index
    %c0_93 = arith.constant 0 : index
    %96 = vector.load %arg6[%c2_91, %c2_92, %c0_93] : memref<10x10x8xf32, #tpu.memory_space<vmem>>, vector<8x8x8xf32>
    %97 = vector.shape_cast %96 : vector<8x8x8xf32> to vector<64x8xf32>
    %98 = tpu.concatenate %91, %93, %95, %97 in 1 : vector<64x8xf32>, vector<64x8xf32>, vector<64x8xf32>, vector<64x8xf32> -> vector<64x32xf32>
    %c3 = arith.constant 3 : index
    %c0_94 = arith.constant 0 : index
    %c0_95 = arith.constant 0 : index
    %99 = vector.load %arg3[%c3, %c0_94, %c0_95] : memref<4x32x4xf32, #tpu.memory_space<vmem>>, vector<1x32x4xf32>
    %100 = vector.shape_cast %99 : vector<1x32x4xf32> to vector<32x4xf32>
    %cst_96 = arith.constant dense<0.000000e+00> : vector<64x4xf32>
    %101 = tpu.matmul %98, %100, %cst_96 {dimension_numbers = #tpu.dot_dimension_numbers<[1], [0], [0], [1], [0, 0, 1, 1], [], []>} : vector<64x32xf32>, vector<32x4xf32>, vector<64x4xf32> -> vector<64x4xf32>
    %cst_97 = arith.constant dense<0.000000e+00> : vector<4xf32>
    %102 = vector.multi_reduction <add>, %101, %cst_97 [0] : vector<64x4xf32> to vector<4xf32>
    %103 = vector.shape_cast %102 : vector<4xf32> to vector<1x4xf32>
    %104 = arith.addf %85, %103 : vector<1x4xf32>
    %105 = arith.mulf %101, %101 : vector<64x4xf32>
    %cst_98 = arith.constant dense<0.000000e+00> : vector<4xf32>
    %106 = vector.multi_reduction <add>, %105, %cst_98 [0] : vector<64x4xf32> to vector<4xf32>
    %107 = vector.shape_cast %106 : vector<4xf32> to vector<1x4xf32>
    %108 = arith.addf %89, %107 : vector<1x4xf32>
    %109 = tpu.concatenate %82, %101 in 1 : vector<64x4xf32>, vector<64x4xf32> -> vector<64x8xf32>
    %110 = vector.shape_cast %109 : vector<64x8xf32> to vector<8x1x8x8xf32>
    %c0_99 = arith.constant 0 : index
    %c1_100 = arith.constant 1 : index
    %c0_101 = arith.constant 0 : index
    %c0_102 = arith.constant 0 : index
    %111 = vector.load %arg4[%c0_99, %c1_100, %c0_101, %c0_102] : memref<8x2x8x8xf32, #tpu.memory_space<vmem>>, vector<8x1x8x8xf32>
    tpu.vector_store %arg4[%c0_99, %c1_100, %c0_101, %c0_102], %110 {strides = array<i32>} : memref<8x2x8x8xf32, #tpu.memory_space<vmem>>, vector<8x1x8x8xf32>,
    %112 = vector.shape_cast %104 : vector<1x4xf32> to vector<1x1x4xf32>
    %c0_103 = arith.constant 0 : index
    %c0_104 = arith.constant 0 : index
    %c0_105 = arith.constant 0 : index
    %113 = vector.load %arg5[%c0_103, %c0_104, %c0_105] : memref<1x2x4xf32, #tpu.memory_space<vmem>>, vector<1x1x4xf32>
    tpu.vector_store %arg5[%c0_103, %c0_104, %c0_105], %112 {strides = array<i32>} : memref<1x2x4xf32, #tpu.memory_space<vmem>>, vector<1x1x4xf32>,
    %114 = vector.shape_cast %108 : vector<1x4xf32> to vector<1x1x4xf32>
    %c0_106 = arith.constant 0 : index
    %c1_107 = arith.constant 1 : index
    %c0_108 = arith.constant 0 : index
    %115 = vector.load %arg5[%c0_106, %c1_107, %c0_108] : memref<1x2x4xf32, #tpu.memory_space<vmem>>, vector<1x1x4xf32>
    tpu.vector_store %arg5[%c0_106, %c1_107, %c0_108], %114 {strides = array<i32>} : memref<1x2x4xf32, #tpu.memory_space<vmem>>, vector<1x1x4xf32>,
    return
  }
  func.func @transform_0(%arg0: i32) -> (i32, i32, i32, i32) {
    %c0_i32 = arith.constant 0 : i32
    %c0_i32_0 = arith.constant 0 : i32
    %c0_i32_1 = arith.constant 0 : i32
    %c0_i32_2 = arith.constant 0 : i32
    return %arg0, %c0_i32, %c0_i32_0, %c0_i32_1 : i32, i32, i32, i32
  }
  func.func @transform_1(%arg0: i32) -> (i32, i32) {
    %c0_i32 = arith.constant 0 : i32
    %c0_i32_0 = arith.constant 0 : i32
    %c0_i32_1 = arith.constant 0 : i32
    return %c0_i32, %c0_i32_0 : i32, i32
  }
  func.func @transform_2(%arg0: i32) -> (i32, i32, i32) {
    %c0_i32 = arith.constant 0 : i32
    %c0_i32_0 = arith.constant 0 : i32
    %c0_i32_1 = arith.constant 0 : i32
    %c0_i32_2 = arith.constant 0 : i32
    return %c0_i32, %c0_i32_0, %c0_i32_1 : i32, i32, i32
  }
  func.func @transform_3(%arg0: i32) -> (i32, i32, i32, i32) {
    %c0_i32 = arith.constant 0 : i32
    %c0_i32_0 = arith.constant 0 : i32
    %c0_i32_1 = arith.constant 0 : i32
    %c0_i32_2 = arith.constant 0 : i32
    return %arg0, %c0_i32, %c0_i32_0, %c0_i32_1 : i32, i32, i32, i32
  }
  func.func @transform_4(%arg0: i32) -> (i32, i32, i32) {
    %c0_i32 = arith.constant 0 : i32
    %c0_i32_0 = arith.constant 0 : i32
    %c0_i32_1 = arith.constant 0 : i32
    return %arg0, %c0_i32, %c0_i32_0 : i32, i32, i32
  }
}

module attributes {stable_mosaic.version = 11 : i64} {
  func.func @_bn_apply_kernel(%arg0: i32, %arg1: memref<256x8xf32, #tpu.memory_space<vmem>>, %arg2: memref<1x8xf32, #tpu.memory_space<vmem>>, %arg3: memref<1x8xf32, #tpu.memory_space<vmem>>, %arg4: memref<256x8xf32, #tpu.memory_space<vmem>>) attributes {dimension_semantics = [#tpu.dimension_semantics<parallel>], iteration_bounds = array<i64: 1>, scalar_prefetch = 0 : i64, scratch_operands = 0 : i64, tpu.core_type = #tpu.core_type<tc>, window_params = [{transform_indices = @transform_0, window_bounds = array<i64: 256, 8>}, {pipeline_mode = #tpu.pipeline_mode<synchronous>, transform_indices = @transform_1, window_bounds = array<i64: 1, 8>}, {pipeline_mode = #tpu.pipeline_mode<synchronous>, transform_indices = @transform_2, window_bounds = array<i64: 1, 8>}, {transform_indices = @transform_3, window_bounds = array<i64: 256, 8>}]} {
    %c0 = arith.constant 0 : index
    %c0_0 = arith.constant 0 : index
    %0 = vector.load %arg1[%c0, %c0_0] : memref<256x8xf32, #tpu.memory_space<vmem>>, vector<256x8xf32>
    %c0_1 = arith.constant 0 : index
    %c0_2 = arith.constant 0 : index
    %1 = vector.load %arg2[%c0_1, %c0_2] : memref<1x8xf32, #tpu.memory_space<vmem>>, vector<1x8xf32>
    %2 = vector.broadcast %1 : vector<1x8xf32> to vector<256x8xf32>
    %3 = arith.mulf %0, %2 : vector<256x8xf32>
    %c0_3 = arith.constant 0 : index
    %c0_4 = arith.constant 0 : index
    %4 = vector.load %arg3[%c0_3, %c0_4] : memref<1x8xf32, #tpu.memory_space<vmem>>, vector<1x8xf32>
    %5 = vector.broadcast %4 : vector<1x8xf32> to vector<256x8xf32>
    %6 = arith.addf %3, %5 : vector<256x8xf32>
    %c0_5 = arith.constant 0 : index
    %c0_6 = arith.constant 0 : index
    %7 = vector.load %arg4[%c0_5, %c0_6] : memref<256x8xf32, #tpu.memory_space<vmem>>, vector<256x8xf32>
    tpu.vector_store %arg4[%c0_5, %c0_6], %6 {strides = array<i32>} : memref<256x8xf32, #tpu.memory_space<vmem>>, vector<256x8xf32>,
    return
  }
  func.func @transform_0(%arg0: i32) -> (i32, i32) {
    %c0_i32 = arith.constant 0 : i32
    %c0_i32_0 = arith.constant 0 : i32
    return %arg0, %c0_i32 : i32, i32
  }
  func.func @transform_1(%arg0: i32) -> (i32, i32) {
    %c0_i32 = arith.constant 0 : i32
    %c0_i32_0 = arith.constant 0 : i32
    %c0_i32_1 = arith.constant 0 : i32
    return %c0_i32, %c0_i32_0 : i32, i32
  }
  func.func @transform_2(%arg0: i32) -> (i32, i32) {
    %c0_i32 = arith.constant 0 : i32
    %c0_i32_0 = arith.constant 0 : i32
    %c0_i32_1 = arith.constant 0 : i32
    return %c0_i32, %c0_i32_0 : i32, i32
  }
  func.func @transform_3(%arg0: i32) -> (i32, i32) {
    %c0_i32 = arith.constant 0 : i32
    %c0_i32_0 = arith.constant 0 : i32
    return %arg0, %c0_i32 : i32, i32
  }
}

</mosaic_0001>

<bundles_post_ra>
// kernel: tile.13
= control target key start
LH: loop header
LB: loop body
LE: loop exit
PB: predicated region body
PF: predicated region fallthrough
CT: control target
= control target key end

     0   :  { %s22_s0 = inlined_call_operand.vmem [shape: f32[4], index: 0, kind: input, shape index: {}]   ;;  %s23_s1 = inlined_call_operand.vmem [shape: f32[2,4], index: 1, kind: output, shape index: {}]  }
   0x1   :  { %v4_v0 = vld [vmem:[%s22_s0] ss:$0 sm:$0xff] }
   0x2   :  { %5 = vst [vmem:[%s23_s1] sm:$0x3] %v4_v0 }

// kernel: tile.14
= control target key start
LH: loop header
LB: loop body
LE: loop exit
PB: predicated region body
PF: predicated region fallthrough
CT: control target
= control target key end

     0   :  { %vm8_vm0 = vcmask 31744   ;;  %vm14_vm1 = vcmask 64544   ;;  %s42_s0 = inlined_call_operand.vmem [shape: f32[2,4], index: 0, kind: input, shape index: {}]   ;;  %s43_s1 = inlined_call_operand.vmem [shape: f32[1,8], index: 1, kind: output, shape index: {}]  }
   0x1   :  { %v5_v0 = vld [vmem:[%s42_s0] sm:$0x3]  ;;  %s25_s0 = smov 4  }
   0x2   :  { %6 = vst [vmem:[#allocation1] sm:$0x3] %v5_v0 }
   0x9   :  { %v11_v1 = vld [vmem:[#allocation1 + $0x1] sm:$0x1]   ;;  %v7_v2 = vld [vmem:[#allocation1] sm:$0x1]  }
   0xa   :  { %12 = vrot.lane.b32.xlu0 %v11_v1, %s25_s0  ;;  %9 = vst.msk [vmem:[#allocation0] sm:$0x1] %vm8_vm0, %v7_v2  }
  0x7c   :  { %v13_v3 = vpop.permute.xlu0 %12  }
  0x7d   :  { %15 = vst.msk [vmem:[#allocation0] sm:$0x1] %vm14_vm1, %v13_v3  }
  0x84   :  { %v20_v4 = vld [vmem:[#allocation0] sm:$0x1] }
  0x85   :  { %23 = vst [vmem:[%s43_s1] sm:$0x1] %v20_v4 }

// kernel: unet_skip_connection_block.3
= control target key start
LH: loop header
LB: loop body
LE: loop exit
PB: predicated region body
PF: predicated region fallthrough
CT: control target
= control target key end

     0   :  { %vm124_vm0 = vcmask 64512   ;;  %s481_s0 = inlined_call_operand.vmem [shape: f32[256,8], index: 0, kind: input, shape index: {}]   ;;  %s482_s1 = inlined_call_operand.vmem [shape: f32[1,8], index: 1, kind: input, shape index: {}]   ;;  %s483_s2 = inlined_call_operand.vmem [shape: f32[1,8], index: 2, kind: input, shape index: {}]   ;;  %s484_s3 = inlined_call_operand.vmem [shape: f32[256,8], index: 3, kind: output, shape index: {}]  }
   0x1   :  { %v14_v0 = vld [vmem:[%s481_s0] sm:$0xff]  ;;  %v15_v4 = vld [vmem:[%s481_s0 + $0x8] sm:$0xff]  ;;  %v16_v5 = vld [vmem:[%s481_s0 + $0x10] sm:$0xff] }
   0x2   :  { %v189_v1 = vld [vmem:[%s482_s1] ss:$0 sm:$0xff]  ;;  %v17_v6 = vld [vmem:[%s481_s0 + $0x18] sm:$0xff]  ;;  %v19_v11 = vld [vmem:[%s481_s0 + $0x28] sm:$0xff] }
   0x3   :  { %v194_v2 = vld [vmem:[%s483_s2] ss:$0 sm:$0xff]  ;;  %v53_v3 = vmul.f32 %v189_v1, %v14_v0  ;;  %v54_v7 = vmul.f32 %v189_v1, %v15_v4  ;;  %v55_v8 = vmul.f32 %v189_v1, %v16_v5  ;;  %v56_v9 = vmul.f32 %v189_v1, %v17_v6  ;;  %v20_v12 = vld [vmem:[%s481_s0 + $0x30] sm:$0xff]  ;;  %v21_v17 = vld [vmem:[%s481_s0 + $0x38] sm:$0xff] }
   0x4   :  { %v18_v10 = vld [vmem:[%s481_s0 + $0x20] sm:$0xff]  ;;  %v58_v15 = vmul.f32 %v189_v1, %v19_v11  ;;  %v59_v16 = vmul.f32 %v189_v1, %v20_v12  ;;  %v23_v19 = vld [vmem:[%s481_s0 + $0x48] sm:$0xff]  ;;  %v60_v23 = vmul.f32 %v189_v1, %v21_v17  ;;  %v24_v24 = vld [vmem:[%s481_s0 + $0x50] sm:$0xff] }
   0x5   :  { %v92_v13 = vadd.f32 %v194_v2, %v53_v3  ;;  %v57_v14 = vmul.f32 %v189_v1, %v18_v10  ;;  %v22_v18 = vld [vmem:[%s481_s0 + $0x40] sm:$0xff]  ;;  %v93_v20 = vadd.f32 %v194_v2, %v54_v7  ;;  %v94_v21 = vadd.f32 %v194_v2, %v55_v8  ;;  %v25_v25 = vld [vmem:[%s481_s0 + $0x58] sm:$0xff]  ;;  %v27_v31 = vld [vmem:[%s481_s0 + $0x68] sm:$0xff] }
   0x6   :  { %v95_v22 = vadd.f32 %v194_v2, %v56_v9  ;;  %v26_v26 = vld [vmem:[%s481_s0 + $0x60] sm:$0xff]  ;;  %v97_v28 = vadd.f32 %v194_v2, %v58_v15  ;;  %v98_v29 = vadd.f32 %v194_v2, %v59_v16  ;;  %v61_v30 = vmul.f32 %v189_v1, %v22_v18  ;;  %v28_v32 = vld [vmem:[%s481_s0 + $0x70] sm:$0xff]  ;;  %v29_v33 = vld [vmem:[%s481_s0 + $0x78] sm:$0xff] }
   0x7   :  { %125 = vst.msk [vmem:[%s484_s3] sm:$0xff] %vm124_vm0, %v92_v13  ;;  %v96_v27 = vadd.f32 %v194_v2, %v57_v14  ;;  %126 = vst.msk [vmem:[%s484_s3 + $0x8] sm:$0xff] %vm124_vm0, %v93_v20  ;;  %v99_v34 = vadd.f32 %v194_v2, %v60_v23  ;;  %v62_v35 = vmul.f32 %v189_v1, %v23_v19  ;;  %v30_v38 = vld [vmem:[%s481_s0 + $0x80] sm:$0xff]  ;;  %v31_v43 = vld [vmem:[%s481_s0 + $0x88] sm:$0xff] }
   0x8   :  { %127 = vst.msk [vmem:[%s484_s3 + $0x10] sm:$0xff] %vm124_vm0, %v94_v21  ;;  %128 = vst.msk [vmem:[%s484_s3 + $0x18] sm:$0xff] %vm124_vm0, %v95_v22  ;;  %v63_v36 = vmul.f32 %v189_v1, %v24_v24  ;;  %v64_v37 = vmul.f32 %v189_v1, %v25_v25  ;;  %v100_v39 = vadd.f32 %v194_v2, %v61_v30  ;;  %v32_v44 = vld [vmem:[%s481_s0 + $0x90] sm:$0xff]  ;;  %v33_v45 = vld [vmem:[%s481_s0 + $0x98] sm:$0xff] }
   0x9   :  { %129 = vst.msk [vmem:[%s484_s3 + $0x20] sm:$0xff] %vm124_vm0, %v96_v27  ;;  %130 = vst.msk [vmem:[%s484_s3 + $0x28] sm:$0xff] %vm124_vm0, %v97_v28  ;;  %v65_v40 = vmul.f32 %v189_v1, %v26_v26  ;;  %v66_v41 = vmul.f32 %v189_v1, %v27_v31  ;;  %v67_v42 = vmul.f32 %v189_v1, %v28_v32  ;;  %v34_v50 = vld [vmem:[%s481_s0 + $0xa0] sm:$0xff]  ;;  %v35_v51 = vld [vmem:[%s481_s0 + $0xa8] sm:$0xff] }
   0xa   :  { %131 = vst.msk [vmem:[%s484_s3 + $0x30] sm:$0xff] %vm124_vm0, %v98_v29  ;;  %132 = vst.msk [vmem:[%s484_s3 + $0x38] sm:$0xff] %vm124_vm0, %v99_v34  ;;  %v101_v46 = vadd.f32 %v194_v2, %v62_v35  ;;  %v102_v47 = vadd.f32 %v194_v2, %v63_v36  ;;  %v103_v48 = vadd.f32 %v194_v2, %v64_v37  ;;  %v36_v52 = vld [vmem:[%s481_s0 + $0xb0] sm:$0xff]  ;;  %v37_v57 = vld [vmem:[%s481_s0 + $0xb8] sm:$0xff] }
   0xb   :  { %v68_v49 = vmul.f32 %v189_v1, %v29_v33  ;;  %133 = vst.msk [vmem:[%s484_s3 + $0x40] sm:$0xff] %vm124_vm0, %v100_v39  ;;  %v104_v53 = vadd.f32 %v194_v2, %v65_v40  ;;  %v105_v54 = vadd.f32 %v194_v2, %v66_v41  ;;  %v106_v55 = vadd.f32 %v194_v2, %v67_v42  ;;  %v38_v62 = vld [vmem:[%s481_s0 + $0xc0] sm:$0xff]  ;;  %v39_v5 = vld [vmem:[%s481_s0 + $0xc8] sm:$0xff]  ;;  %v40_v6 = vld [vmem:[%s481_s0 + $0xd0] sm:$0xff] }
   0xc   :  { %v69_v56 = vmul.f32 %v189_v1, %v30_v38  ;;  %134 = vst.msk [vmem:[%s484_s3 + $0x48] sm:$0xff] %vm124_vm0, %v101_v46  ;;  %135 = vst.msk [vmem:[%s484_s3 + $0x50] sm:$0xff] %vm124_vm0, %v102_v47  ;;  %v70_v59 = vmul.f32 %v189_v1, %v31_v43  ;;  %v71_v60 = vmul.f32 %v189_v1, %v32_v44  ;;  %v41_v7 = vld [vmem:[%s481_s0 + $0xd8] sm:$0xff]  ;;  %v42_v12 = vld [vmem:[%s481_s0 + $0xe0] sm:$0xff] }
   0xd   :  { %136 = vst.msk [vmem:[%s484_s3 + $0x58] sm:$0xff] %vm124_vm0, %v103_v48  ;;  %v107_v58 = vadd.f32 %v194_v2, %v68_v49  ;;  %v72_v61 = vmul.f32 %v189_v1, %v33_v45  ;;  %137 = vst.msk [vmem:[%s484_s3 + $0x60] sm:$0xff] %vm124_vm0, %v104_v53  ;;  %v73_v0 = vmul.f32 %v189_v1, %v34_v50  ;;  %v43_v13 = vld [vmem:[%s481_s0 + $0xe8] sm:$0xff]  ;;  %v44_v14 = vld [vmem:[%s481_s0 + $0xf0] sm:$0xff] }
   0xe   :  { %138 = vst.msk [vmem:[%s484_s3 + $0x68] sm:$0xff] %vm124_vm0, %v105_v54  ;;  %139 = vst.msk [vmem:[%s484_s3 + $0x70] sm:$0xff] %vm124_vm0, %v106_v55  ;;  %v108_v63 = vadd.f32 %v194_v2, %v69_v56  ;;  %v74_v3 = vmul.f32 %v189_v1, %v35_v51  ;;  %v75_v4 = vmul.f32 %v189_v1, %v36_v52  ;;  %v45_v19 = vld [vmem:[%s481_s0 + $0xf8] sm:$0xff] }
   0xf   :  { %140 = vst.msk [vmem:[%s484_s3 + $0x78] sm:$0xff] %vm124_vm0, %v107_v58  ;;  %v109_v8 = vadd.f32 %v194_v2, %v70_v59  ;;  %v110_v9 = vadd.f32 %v194_v2, %v71_v60  ;;  %v111_v10 = vadd.f32 %v194_v2, %v72_v61  ;;  %v76_v11 = vmul.f32 %v189_v1, %v37_v57 }
  0x10   :  { %141 = vst.msk [vmem:[%s484_s3 + $0x80] sm:$0xff] %vm124_vm0, %v108_v63  ;;  %v112_v15 = vadd.f32 %v194_v2, %v73_v0  ;;  %v113_v16 = vadd.f32 %v194_v2, %v74_v3  ;;  %v114_v17 = vadd.f32 %v194_v2, %v75_v4  ;;  %v77_v18 = vmul.f32 %v189_v1, %v38_v62 }
  0x11   :  { %142 = vst.msk [vmem:[%s484_s3 + $0x88] sm:$0xff] %vm124_vm0, %v109_v8  ;;  %143 = vst.msk [vmem:[%s484_s3 + $0x90] sm:$0xff] %vm124_vm0, %v110_v9  ;;  %v115_v20 = vadd.f32 %v194_v2, %v76_v11  ;;  %v78_v21 = vmul.f32 %v189_v1, %v39_v5  ;;  %v79_v22 = vmul.f32 %v189_v1, %v40_v6 }
  0x12   :  { %144 = vst.msk [vmem:[%s484_s3 + $0x98] sm:$0xff] %vm124_vm0, %v111_v10  ;;  %v80_v23 = vmul.f32 %v189_v1, %v41_v7  ;;  %145 = vst.msk [vmem:[%s484_s3 + $0xa0] sm:$0xff] %vm124_vm0, %v112_v15  ;;  %v116_v24 = vadd.f32 %v194_v2, %v77_v18  ;;  %v81_v25 = vmul.f32 %v189_v1, %v42_v12 }
  0x13   :  { %146 = vst.msk [vmem:[%s484_s3 + $0xa8] sm:$0xff] %vm124_vm0, %v113_v16  ;;  %147 = vst.msk [vmem:[%s484_s3 + $0xb0] sm:$0xff] %vm124_vm0, %v114_v17  ;;  %v82_v26 = vmul.f32 %v189_v1, %v43_v13  ;;  %v83_v27 = vmul.f32 %v189_v1, %v44_v14  ;;  %v117_v28 = vadd.f32 %v194_v2, %v78_v21 }
  0x14   :  { %148 = vst.msk [vmem:[%s484_s3 + $0xb8] sm:$0xff] %vm124_vm0, %v115_v20  ;;  %v118_v29 = vadd.f32 %v194_v2, %v79_v22  ;;  %v119_v30 = vadd.f32 %v194_v2, %v80_v23  ;;  %v84_v31 = vmul.f32 %v189_v1, %v45_v19  ;;  %149 = vst.msk [vmem:[%s484_s3 + $0xc0] sm:$0xff] %vm124_vm0, %v116_v24 }
  0x15   :  { %v120_v32 = vadd.f32 %v194_v2, %v81_v25  ;;  %v121_v33 = vadd.f32 %v194_v2, %v82_v26  ;;  %v122_v34 = vadd.f32 %v194_v2, %v83_v27  ;;  %150 = vst.msk [vmem:[%s484_s3 + $0xc8] sm:$0xff] %vm124_vm0, %v117_v28 }
  0x16   :  { %151 = vst.msk [vmem:[%s484_s3 + $0xd0] sm:$0xff] %vm124_vm0, %v118_v29  ;;  %152 = vst.msk [vmem:[%s484_s3 + $0xd8] sm:$0xff] %vm124_vm0, %v119_v30  ;;  %v123_v1 = vadd.f32 %v194_v2, %v84_v31 }
  0x17   :  { %153 = vst.msk [vmem:[%s484_s3 + $0xe0] sm:$0xff] %vm124_vm0, %v120_v32  ;;  %154 = vst.msk [vmem:[%s484_s3 + $0xe8] sm:$0xff] %vm124_vm0, %v121_v33 }
  0x18   :  { %155 = vst.msk [vmem:[%s484_s3 + $0xf0] sm:$0xff] %vm124_vm0, %v122_v34  ;;  %156 = vst.msk [vmem:[%s484_s3 + $0xf8] sm:$0xff] %vm124_vm0, %v123_v1 }

// kernel: unet_skip_connection_block.2
= control target key start
LH: loop header
LB: loop body
LE: loop exit
PB: predicated region body
PF: predicated region fallthrough
CT: control target
= control target key end

     0   :  { %s2416_s15 = smov 0   ;;  %s3400_s0 = inlined_call_operand.vmem [shape: f32[2,9,9,16], index: 0, kind: input, shape index: {}]   ;;  %s3401_s1 = inlined_call_operand.vmem [shape: f32[64,8], index: 1, kind: input, shape index: {}]   ;;  %s3402_s2 = inlined_call_operand.vmem [shape: f32[4,32,4], index: 2, kind: input, shape index: {}]   ;;  %s3403_s3 = inlined_call_operand.vmem [shape: f32[16,2,8,8], index: 3, kind: output, shape index: {0}]   ;;  %s3404_s4 = inlined_call_operand.vmem [shape: f32[2,2,4], index: 4, kind: output, shape index: {1}]  }
   0x1 LB: > { %s2422_s16 = sadd.s32 4294967295, %s2382_s15   ;;  %p2111_p0 = scmp.ge.s32.totalorder %s2382_s15, 1  ;;  %s2382_s15 = sphi %s2416_s15, %s15_s15  }
   0x2   : > { %p165_p1 = scmp.lt.s32.totalorder %s2382_s15, 3 }
   0x4   : > { %p166_p2 = pnand %p2111_p0, %p165_p1 }
   0x5   : > { %p196_p3 = scmp.lt.s32.totalorder (!%p166_p2), %s2422_s16, 1  ;;  %s2384_s8 = smov (!%p166_p2), 32  }
   0x6   : > { %169 = sbr.rel (%p166_p2) target bundleno = 977 (0x3d1), region = 32  ;;  %s2385_s9 = smov (!%p166_p2), 16  }
   0x7   : > { %s2386_s14 = smov (!%p166_p2), 48   ;;  %s2388_s17 = smov (!%p166_p2), 8  }
   0x8   : > { %s2389_s18 = smov (!%p166_p2), 24  }
   0xb   : > { %v436_v0 = vld [vmem:[%s3401_s1 + $0x38] sm:$0xff]  ;;  %v435_v1 = vld [vmem:[%s3401_s1 + $0x30] sm:$0xff]  ;;  %s2434_s21 = scalar_select %p196_p3, %s2422_s16, 1  ;;  %v434_v2 = vld [vmem:[%s3401_s1 + $0x28] sm:$0xff]  ;;  %vm300_vm0 = vcmask 1046528  }
   0xc   : > { %2244 = vmatprep.subr.mxu0 %v436_v0  ;;  %v433_v3 = vld [vmem:[%s3401_s1 + $0x20] sm:$0xff]  ;;  %v432_v4 = vld [vmem:[%s3401_s1 + $0x18] sm:$0xff]  ;;  %v431_v5 = vld [vmem:[%s3401_s1 + $0x10] sm:$0xff] }
   0xd   : > { %2245 = vmatpush3.msra.mxu0 %v436_v0  ;;  %s2360_s24 = smul.u32 144, %s2434_s21  ;;  %v430_v44 = vld [vmem:[%s3401_s1 + $0x8] sm:$0xff]  ;;  %v429_v48 = vld [vmem:[%s3401_s1] sm:$0xff]  ;;  %s2116_s30 = sshll.u32 %s2434_s21, 1 }
   0xe   : > { %2246 = vmatprep.subr.mxu0 %v435_v1  ;;  %s211_s7 = scalar_lea.vmem %s3404_s4, %s2116_s30 }
   0xf   : > { %2247 = vmatpush3.msra.mxu0 %v435_v1  ;;  %s2446_s29 = scalar_lea.vmem %s3400_s0, %s2360_s24 }
  0x10   : > { %2248 = vmatprep.subr.mxu0 %v434_v2  ;;  %v214_v6 = vld [vmem:[%s2446_s29 + $0x10] sm:$0xff]  ;;  %v212_v7 = vld [vmem:[%s2446_s29] sm:$0xff]  ;;  %v213_v8 = vld [vmem:[%s2446_s29 + $0x8] sm:$0x1] }
  0x11   : > { %2249 = vmatpush3.msra.mxu0 %v434_v2  ;;  %vm232_vm1 = vcmp.gt.f32.partialorder %v214_v6, 0.0  ;;  %v250_v9 = vmul.f32 0.2, %v214_v6  ;;  %vm230_vm2 = vcmp.gt.f32.partialorder %v212_v7, 0.0  ;;  %vm231_vm3 = vcmp.gt.f32.partialorder %v213_v8, 0.0  ;;  %v216_v10 = vld [vmem:[%s2446_s29 + $0x20] sm:$0xff] }
  0x12   : > { %2250 = vmatprep.subr.mxu0 %v433_v3  ;;  %v248_v11 = vmul.f32 0.2, %v212_v7  ;;  %v249_v12 = vmul.f32 0.2, %v213_v8  ;;  %vm234_vm4 = vcmp.gt.f32.partialorder %v216_v10, 0.0  ;;  %v218_v13 = vld [vmem:[%s2446_s29 + $0x30] sm:$0xff] }
  0x13   : > { %2251 = vmatpush3.msra.mxu0 %v433_v3  ;;  %v2459_v14 = vsel %vm232_vm1, %v214_v6, %v250_v9  ;;  %v252_v15 = vmul.f32 0.2, %v216_v10  ;;  %v215_v16 = vld [vmem:[%s2446_s29 + $0x18] sm:$0x1]  ;;  %v217_v17 = vld [vmem:[%s2446_s29 + $0x28] sm:$0x1] }
  0x14   : > { %2252 = vmatprep.subr.mxu0 %v432_v4  ;;  %354 = vrot.lane.b32.xlu1 %v2459_v14, %s2384_s8  ;;  %v304_v18 = vrot.slane %v2459_v14, 1  ;;  %v2467_v19 = vsel %vm230_vm2, %v212_v7, %v248_v11  ;;  %v267_v20 = vsel %vm231_vm3, %v213_v8, %v249_v12  ;;  %vm233_vm5 = vcmp.gt.f32.partialorder %v215_v16, 0.0  ;;  %v219_v21 = vld [vmem:[%s2446_s29 + $0x38] sm:$0x1]  ;;  %v220_v28 = vld [vmem:[%s2446_s29 + $0x40] sm:$0xff]  ;;  %v222_v43 = vld [vmem:[%s2446_s29 + $0x50] sm:$0xff] }
  0x15   : > { %2253 = vmatpush3.msra.mxu0 %v432_v4  ;;  %v301_v22 = vrot.slane %v2467_v19, 1  ;;  %v302_v23 = vrot.slane %v267_v20, 1  ;;  %v2473_v24 = vsel %vm234_vm4, %v216_v10, %v252_v15  ;;  %v251_v25 = vmul.f32 0.2, %v215_v16  ;;  %v221_v32 = vld [vmem:[%s2446_s29 + $0x48] sm:$0x1] }
  0x16   : > { %2254 = vmatprep.subr.mxu0 %v431_v5  ;;  %v307_v26 = vrot.slane %v2473_v24, 1  ;;  %vm235_vm6 = vcmp.gt.f32.partialorder %v217_v17, 0.0  ;;  %v253_v27 = vmul.f32 0.2, %v217_v17  ;;  %vm236_vm7 = vcmp.gt.f32.partialorder %v218_v13, 0.0  ;;  %v224_v58 = vld [vmem:[%s2446_s29 + $0x60] sm:$0xff] }
  0x17   : > { %2255 = vmatpush3.msra.mxu0 %v431_v5  ;;  %v303_v29 = vsel %vm300_vm0, %v301_v22, %v302_v23  ;;  %v269_v30 = vsel %vm233_vm5, %v215_v16, %v251_v25  ;;  %vm237_vm8 = vcmp.gt.f32.partialorder %v219_v21, 0.0  ;;  %v254_v31 = vmul.f32 0.2, %v218_v13  ;;  %v223_v47 = vld [vmem:[%s2446_s29 + $0x58] sm:$0x1]  ;;  %v226_v1 = vld [vmem:[%s2446_s29 + $0x70] sm:$0xff] }
  0x18   : > { %330 = vrot.lane.b32.xlu0 %v303_v29, %s2385_s9  ;;  %356 = vrot.lane.b32.xlu1 %v2473_v24, %s2384_s8  ;;  %v305_v33 = vrot.slane %v269_v30, 1  ;;  %v271_v34 = vsel %vm235_vm6, %v217_v17, %v253_v27  ;;  %v255_v35 = vmul.f32 0.2, %v219_v21  ;;  %v256_v38 = vmul.f32 0.2, %v220_v28  ;;  %v228_v10 = vld [vmem:[%s2446_s29 + $0x80] sm:$0xff] }
  0x19   : > { %v308_v36 = vrot.slane %v271_v34, 1  ;;  %v2482_v37 = vsel %vm236_vm7, %v218_v13, %v254_v31  ;;  %v257_v42 = vmul.f32 0.2, %v221_v32  ;;  %vm238_vm9 = vcmp.gt.f32.partialorder %v220_v28, 0.0  ;;  %2256 = vmatprep.subr.mxu0 %v430_v44  ;;  %v225_v59 = vld [vmem:[%s2446_s29 + $0x68] sm:$0x1] }
  0x1a   : > { %v306_v39 = vsel %vm300_vm0, %v304_v18, %v305_v33  ;;  %v273_v40 = vsel %vm237_vm8, %v219_v21, %v255_v35  ;;  %v310_v41 = vrot.slane %v2482_v37, 1  ;;  %vm239_vm10 = vcmp.gt.f32.partialorder %v221_v32, 0.0  ;;  %2257 = vmatpush3.msra.mxu0 %v430_v44  ;;  %v227_v2 = vld [vmem:[%s2446_s29 + $0x78] sm:$0x1]  ;;  %v229_v13 = vld [vmem:[%s2446_s29 + $0x88] sm:$0x1] }
  0x1b   : > { %v309_v45 = vsel %vm300_vm0, %v307_v26, %v308_v36  ;;  %v311_v46 = vrot.slane %v273_v40, 1  ;;  %v2498_v50 = vsel %vm238_vm9, %v220_v28, %v256_v38  ;;  %v275_v51 = vsel %vm239_vm10, %v221_v32, %v257_v42  ;;  %2258 = vmatprep.subr.mxu0 %v429_v48  ;;  %s2390_s29 = smov 4  }
  0x1c   : > { %332 = vrot.lane.b32.xlu0 %v306_v39, %s2385_s9  ;;  %380 = vrot.lane.b32.xlu1 %v309_v45, %s2386_s14  ;;  %v258_v52 = vmul.f32 0.2, %v222_v43  ;;  %v259_v53 = vmul.f32 0.2, %v223_v47  ;;  %vm240_vm11 = vcmp.gt.f32.partialorder %v222_v43, 0.0  ;;  %vm241_vm12 = vcmp.gt.f32.partialorder %v223_v47, 0.0 }
  0x1d   : > { %v312_v49 = vsel %vm300_vm0, %v310_v41, %v311_v46  ;;  %2259 = vmatpush3.msra.mxu0 %v429_v48  ;;  %v313_v54 = vrot.slane %v2498_v50, 1  ;;  %v314_v55 = vrot.slane %v275_v51, 1  ;;  %v260_v63 = vmul.f32 0.2, %v224_v58 }
  0x1e   : > { %v2503_v56 = vsel %vm240_vm11, %v222_v43, %v258_v52  ;;  %v277_v57 = vsel %vm241_vm12, %v223_v47, %v259_v53  ;;  %v261_v0 = vmul.f32 0.2, %v225_v59  ;;  %vm242_vm13 = vcmp.gt.f32.partialorder %v224_v58, 0.0 }
  0x1f   : > { %v315_v60 = vsel %vm300_vm0, %v313_v54, %v314_v55  ;;  %v316_v61 = vrot.slane %v2503_v56, 1  ;;  %v317_v62 = vrot.slane %v277_v57, 1  ;;  %vm243_vm14 = vcmp.gt.f32.partialorder %v225_v59, 0.0 }
  0x20   : > { %378 = vrot.lane.b32.xlu0 %v306_v39, %s2386_s14  ;;  %336 = vrot.lane.b32.xlu1 %v312_v49, %s2385_s9  ;;  %v2518_v4 = vsel %vm242_vm13, %v224_v58, %v260_v63  ;;  %v279_v5 = vsel %vm243_vm14, %v225_v59, %v261_v0  ;;  %v262_v6 = vmul.f32 0.2, %v226_v1  ;;  %v263_v7 = vmul.f32 0.2, %v227_v2 }
  0x21   : > { %v318_v3 = vsel %vm300_vm0, %v316_v61, %v317_v62  ;;  %vm244_vm15 = vcmp.gt.f32.partialorder %v226_v1, 0.0  ;;  %vm245_vm1 = vcmp.gt.f32.partialorder %v227_v2, 0.0  ;;  %v319_v8 = vrot.slane %v2518_v4, 1 }
  0x22   : > { %v320_v9 = vrot.slane %v279_v5, 1  ;;  %v2524_v11 = vsel %vm244_vm15, %v226_v1, %v262_v6  ;;  %v281_v12 = vsel %vm245_vm1, %v227_v2, %v263_v7  ;;  %v264_v15 = vmul.f32 0.2, %v228_v10 }
  0x23   : > { %v322_v17 = vrot.slane %v2524_v11, 1  ;;  %v323_v18 = vrot.slane %v281_v12, 1  ;;  %v265_v20 = vmul.f32 0.2, %v229_v13  ;;  %vm246_vm2 = vcmp.gt.f32.partialorder %v228_v10, 0.0 }
  0x24   : > { %334 = vrot.lane.b32.xlu0 %v309_v45, %s2385_s9  ;;  %360 = vrot.lane.b32.xlu1 %v2498_v50, %s2384_s8  ;;  %v321_v16 = vsel %vm300_vm0, %v319_v8, %v320_v9  ;;  %vm247_vm3 = vcmp.gt.f32.partialorder %v229_v13, 0.0  ;;  %v282_v22 = vsel %vm246_vm2, %v228_v10, %v264_v15  ;;  %vm567_vm4 = vcmask 64512  }
  0x25   : > { %v324_v21 = vsel %vm300_vm0, %v322_v17, %v323_v18  ;;  %v283_v23 = vsel %vm247_vm3, %v229_v13, %v265_v20  ;;  %v327_v25 = vrot.slane %v282_v22, 1  ;;  %vm569_vm5 = vcmask 58368  }
  0x26   : > { %v328_v26 = vrot.slane %v283_v23, 1  ;;  %vm574_vm6 = vcmask 57344   ;;  %v2387_v27 = vmov 0.0   ;;  %vm411_vm7 = vcmask 261120  }
  0x27   : > { %568 = vst.msk [vmem:[#allocation2] sm:$0xff] %vm567_vm4, %v2387_v27  ;;  %572 = vst.msk [vmem:[#allocation2 + $0x90] sm:$0xff] %vm567_vm4, %v2387_v27  ;;  %vm420_vm8 = vcmask 392192   ;;  %vm437_vm9 = vcmask 523264   ;;  %vm756_vm10 = vcmask 195584   ;;  %vm898_vm11 = vcmask 31744  }
  0x28   : > { %358 = vrot.lane.b32.xlu0 %v2482_v37, %s2384_s8  ;;  %384 = vrot.lane.b32.xlu1 %v315_v60, %s2386_s14  ;;  %570 = vst.msk [vmem:[#allocation2 + $0x8] sm:$0x3] %vm569_vm5, %v2387_v27  ;;  %573 = vst.msk [vmem:[#allocation2 + $0x98] sm:$0x3] %vm569_vm5, %v2387_v27  ;;  %v329_v28 = vsel %vm300_vm0, %v327_v25, %v328_v26  ;;  %vm402_vm0 = vcmask 130048   ;;  %vm2015_vm12 = vcmask 24576  }
  0x29   : > { %576 = vst.msk [vmem:[#allocation2 + $0x10] sm:$0x1] %vm574_vm6, %v2387_v27  ;;  %577 = vst.msk [vmem:[#allocation2 + $0x20] sm:$0x1] %vm574_vm6, %v2387_v27 }
  0x2a   : > { %578 = vst.msk [vmem:[#allocation2 + $0x30] sm:$0x1] %vm574_vm6, %v2387_v27  ;;  %579 = vst.msk [vmem:[#allocation2 + $0x40] sm:$0x1] %vm574_vm6, %v2387_v27 }
  0x2b   : > { %580 = vst.msk [vmem:[#allocation2 + $0x50] sm:$0x1] %vm574_vm6, %v2387_v27  ;;  %581 = vst.msk [vmem:[#allocation2 + $0x60] sm:$0x1] %vm574_vm6, %v2387_v27 }
  0x2c   : > { %382 = vrot.lane.b32.xlu0 %v312_v49, %s2386_s14  ;;  %340 = vrot.lane.b32.xlu1 %v318_v3, %s2385_s9  ;;  %582 = vst.msk [vmem:[#allocation2 + $0x70] sm:$0x1] %vm574_vm6, %v2387_v27  ;;  %583 = vst.msk [vmem:[#allocation2 + $0x80] sm:$0x1] %vm574_vm6, %v2387_v27 }
  0x2d   : > { %586 = vst.msk [vmem:[#allocation2 + $0x19] sm:$0x1] %vm574_vm6, %v2387_v27  ;;  %587 = vst.msk [vmem:[#allocation2 + $0x29] sm:$0x1] %vm574_vm6, %v2387_v27 }
  0x2e   : > { %588 = vst.msk [vmem:[#allocation2 + $0x39] sm:$0x1] %vm574_vm6, %v2387_v27  ;;  %589 = vst.msk [vmem:[#allocation2 + $0x49] sm:$0x1] %vm574_vm6, %v2387_v27 }
  0x2f   : > { %590 = vst.msk [vmem:[#allocation2 + $0x59] sm:$0x1] %vm574_vm6, %v2387_v27  ;;  %591 = vst.msk [vmem:[#allocation2 + $0x69] sm:$0x1] %vm574_vm6, %v2387_v27  ;;  %v2567_v29 = vld [vmem:[#allocation2 + $0x1] sm:$0xff] }
  0x30   : > { %338 = vrot.lane.b32.xlu0 %v315_v60, %s2385_s9  ;;  %364 = vrot.lane.b32.xlu1 %v2518_v4, %s2384_s8  ;;  %592 = vst.msk [vmem:[#allocation2 + $0x79] sm:$0x1] %vm574_vm6, %v2387_v27  ;;  %593 = vst.msk [vmem:[#allocation2 + $0x89] sm:$0x1] %vm574_vm6, %v2387_v27 }
  0x31   : > { %585 = vst.msk [vmem:[#allocation2 + $0x9] sm:$0x1] %vm574_vm6, %v2387_v27  ;;  %575 = vst.msk [vmem:[#allocation2] sm:$0x1] %vm574_vm6, %v2387_v27 }
  0x32   : > { %584 = vst.msk [vmem:[#allocation2 + $0x90] sm:$0x1] %vm574_vm6, %v2387_v27  ;;  %594 = vst.msk [vmem:[#allocation2 + $0x99] sm:$0x1] %vm574_vm6, %v2387_v27 }
  0x34   : > { %362 = vrot.lane.b32.xlu0 %v2503_v56, %s2384_s8  ;;  %388 = vrot.lane.b32.xlu1 %v321_v16, %s2386_s14 }
  0x38   : > { %386 = vrot.lane.b32.xlu0 %v318_v3, %s2386_s14  ;;  %344 = vrot.lane.b32.xlu1 %v324_v21, %s2385_s9  ;;  %v951_v30 = vld [vmem:[#allocation2 + $0x2] sm:$0xff] }
  0x39   : > { %v1337_v15 = vld [vmem:[#allocation2 + $0x90] sm:$0xff] }
  0x3c   : > { %342 = vrot.lane.b32.xlu0 %v321_v16, %s2385_s9  ;;  %368 = vrot.lane.b32.xlu1 %v282_v22, %s2384_s8 }
  0x40   : > { %366 = vrot.lane.b32.xlu0 %v2524_v11, %s2384_s8  ;;  %392 = vrot.lane.b32.xlu1 %v329_v28, %s2386_s14  ;;  %v768_v28 = vld [vmem:[%s3402_s2 + $0x18] sm:$0xff]  ;;  %s2113_s8 = sshll.u32 %s2422_s16, 3 }
  0x41   : > { %2272 = vmatprep.subr.mxu1 %v768_v28  ;;  %p202_p4 = scmp.lt.s32.totalorder %s2113_s8, 15 }
  0x42   : > { %2273 = vmatpush3.msra.mxu1 %v768_v28  ;;  %v2136_v28 = vld [vmem:[%s3402_s2 + $0x38] sm:$0xff] }
  0x43   : > { %s3406_s8 = smov (!%p202_p4, %s2113_s8), 15 }
  0x44   : > { %390 = vrot.lane.b32.xlu0 %v324_v21, %s2386_s14  ;;  %s2179_s21 = sshll.u32 %s3406_s8, 4 }
  0x45   : > { %s3331_s12 = scalar_lea.vmem %s3403_s3, %s2179_s21 }
  0x48   : > { %652 = vrot.lane.b32.xlu0 %v2567_v29, %s2388_s17 }
  0x4c   : > { %975 = vrot.lane.b32.xlu0 %v951_v30, %s2388_s17  ;;  %v767_v30 = vld [vmem:[%s3402_s2 + $0x10] sm:$0xff] }
  0x4d   : > { %2274 = vmatprep.subr.mxu1 %v767_v30 }
  0x4e   : > { %2275 = vmatpush3.msra.mxu1 %v767_v30 }
  0x50   : > { %1400 = vrot.lane.b32.xlu0 %v1337_v15, %s2385_s9 }
  0x86   : > { %v355_v31 = vpop.permute.xlu1 %354 }
  0x8a   : > { %v331_v32 = vpop.permute.xlu0 %330  ;;  %v357_v33 = vpop.permute.xlu1 %356 }
  0x8b   : > { %v403_v36 = vsel %vm402_vm0, %v2467_v19, %v331_v32  ;;  %v765_v32 = vld [vmem:[%s3402_s2] sm:$0xff] }
  0x8c   : > { %v412_v41 = vsel %vm411_vm7, %v403_v36, %v355_v31  ;;  %v766_v31 = vld [vmem:[%s3402_s2 + $0x8] sm:$0xff] }
  0x8d   : > { %2276 = vmatprep.subr.mxu1 %v766_v31 }
  0x8e   : > { %v333_v34 = vpop.permute.xlu0 %332  ;;  %v381_v35 = vpop.permute.xlu1 %380  ;;  %2277 = vmatpush3.msra.mxu1 %v766_v31 }
  0x8f   : > { %v404_v38 = vsel %vm402_vm0, %v2459_v14, %v333_v34  ;;  %2278 = vmatprep.subr.mxu1 %v765_v32 }
  0x90   : > { %v413_v39 = vsel %vm411_vm7, %v404_v38, %v357_v33  ;;  %2279 = vmatpush3.msra.mxu1 %v765_v32 }
  0x91   : > { %v422_v44 = vsel %vm420_vm8, %v413_v39, %v381_v35  ;;  %2292 = vmatprep.subr.mxu1 %v2136_v28 }
  0x92   : > { %v379_v40 = vpop.permute.xlu0 %378  ;;  %v337_v42 = vpop.permute.xlu1 %336 }
  0x93   : > { %v421_v43 = vsel %vm420_vm8, %v412_v41, %v379_v40  ;;  %v406_v14 = vsel %vm402_vm0, %v2482_v37, %v337_v42 }
  0x94   : > { %2260 = vmatprep.mubr.msk.f32.mxu0 %vm437_vm9, %v421_v43 }
  0x95   : > { %2261 = vmatmul.mubr.msk.f32.vlgmr.msra.gmra.mxu0 %vm437_vm9, %v422_v44 }
  0x96   : > { %v335_v19 = vpop.permute.xlu0 %334  ;;  %v361_v45 = vpop.permute.xlu1 %360 }
  0x97   : > { %v405_v46 = vsel %vm402_vm0, %v2473_v24, %v335_v19  ;;  %v415_v49 = vsel %vm411_vm7, %v406_v14, %v361_v45 }
  0x9a   : > { %v359_v47 = vpop.permute.xlu0 %358  ;;  %v385_v48 = vpop.permute.xlu1 %384 }
  0x9b   : > { %v414_v51 = vsel %vm411_vm7, %v405_v46, %v359_v47  ;;  %v424_v53 = vsel %vm420_vm8, %v415_v49, %v385_v48  ;;  %v2148_v47 = vld [vmem:[%s3402_s2 + $0x58] sm:$0xff]  ;;  %v2147_v48 = vld [vmem:[%s3402_s2 + $0x50] sm:$0xff] }
  0x9c   : > { %2312 = vmatprep.subr.mxu0 %v2148_v47 }
  0x9d   : > { %2313 = vmatpush3.msra.mxu0 %v2148_v47 }
  0x9e   : > { %v383_v52 = vpop.permute.xlu0 %382  ;;  %v341_v54 = vpop.permute.xlu1 %340  ;;  %2314 = vmatprep.subr.mxu0 %v2147_v48 }
  0x9f   : > { %v423_v55 = vsel %vm420_vm8, %v414_v51, %v383_v52  ;;  %v408_v24 = vsel %vm402_vm0, %v2503_v56, %v341_v54  ;;  %v2146_v51 = vld [vmem:[%s3402_s2 + $0x48] sm:$0xff]  ;;  %2315 = vmatpush3.msra.mxu0 %v2147_v48  ;;  %v2145_v52 = vld [vmem:[%s3402_s2 + $0x40] sm:$0xff] }
  0xa0   : > { %2263 = vmatprep.mubr.msk.f32.mxu0 %vm437_vm9, %v423_v55  ;;  %2316 = vmatprep.subr.mxu0 %v2146_v51  ;;  %v2133_v48 = vld [vmem:[%s3402_s2 + $0x20] sm:$0xff] }
  0xa1   : > { %2264 = vmatmul.mubr.msk.f32.gmra.mxu0 %vm437_vm9, %v424_v53 }
  0xa2   : > { %v339_v37 = vpop.permute.xlu0 %338  ;;  %v365_v57 = vpop.permute.xlu1 %364  ;;  %2317 = vmatpush3.msra.mxu0 %v2146_v51 }
  0xa3   : > { %v407_v58 = vsel %vm402_vm0, %v2498_v50, %v339_v37  ;;  %v417_v61 = vsel %vm411_vm7, %v408_v24, %v365_v57  ;;  %2318 = vmatprep.subr.mxu0 %v2145_v52 }
  0xa4   : > { %2319 = vmatpush3.msra.mxu0 %v2145_v52 }
  0xa6   : > { %v363_v59 = vpop.permute.xlu0 %362  ;;  %v389_v60 = vpop.permute.xlu1 %388 }
  0xa7   : > { %v416_v62 = vsel %vm411_vm7, %v407_v58, %v363_v59  ;;  %v426_v0 = vsel %vm420_vm8, %v417_v61, %v389_v60 }
  0xaa   : > { %v387_v63 = vpop.permute.xlu0 %386  ;;  %v345_v1 = vpop.permute.xlu1 %344 }
  0xab   : > { %v425_v2 = vsel %vm420_vm8, %v416_v62, %v387_v63  ;;  %v410_v50 = vsel %vm402_vm0, %v2524_v11, %v345_v1  ;;  %v2613_v11 = vld [vmem:[#allocation2 + $0x91] sm:$0xff] }
  0xac   : > { %2266 = vmatprep.mubr.msk.f32.mxu0 %vm437_vm9, %v425_v2  ;;  %1432 = vrot.lane.b32.xlu0 %v2613_v11, %s2389_s18 }
  0xad   : > { %2267 = vmatmul.mubr.msk.f32.gmra.mxu0 %vm437_vm9, %v426_v0 }
  0xae   : > { %v343_v56 = vpop.permute.xlu0 %342  ;;  %v369_v3 = vpop.permute.xlu1 %368 }
  0xaf   : > { %v409_v5 = vsel %vm402_vm0, %v2518_v4, %v343_v56  ;;  %v419_v7 = vsel %vm411_vm7, %v410_v50, %v369_v3 }
  0xb2   : > { %v367_v6 = vpop.permute.xlu0 %366  ;;  %v393_v8 = vpop.permute.xlu1 %392 }
  0xb3   : > { %v418_v9 = vsel %vm411_vm7, %v409_v5, %v367_v6  ;;  %v428_v12 = vsel %vm420_vm8, %v419_v7, %v393_v8 }
  0xb6   : > { %v391_v10 = vpop.permute.xlu0 %390 }
  0xb7   : > { %v427_v13 = vsel %vm420_vm8, %v418_v9, %v391_v10  ;;  %v612_v10 = vld [vmem:[#allocation2] sm:$0xff] }
  0xb8   : > { %2269 = vmatprep.mubr.msk.f32.mxu0 %vm437_vm9, %v427_v13 }
  0xb9   : > { %2270 = vmatmul.mubr.msk.f32.gmra.mxu0 %vm437_vm9, %v428_v12 }
  0xba   : > { %v653_v57 = vpop.permute.xlu0 %652 }
  0xbe   : > { %v2763_v24 = vpop.permute.xlu0 %975 }
  0xc2   : > { %v2771_v59 = vpop.permute.xlu0 %1400 }
 0x11e   : > { %v2781_v62 = vpop.permute.xlu0 %1432 }
 0x155   : > { %v2262_v4 = vpop.f32.mrf.mxu0 }
 0x156   : > { %v596_v16 = vmax.f32 %v2262_v4, 0.0 }
 0x157   : > { %v528_v17 = vpop.f32.mrf.mxu0 }
 0x158   : > { %605 = vst.msk [vmem:[#allocation2 + $0x21] sm:$0xff] %vm567_vm4, %v596_v16  ;;  %v595_v18 = vmax.f32 %v528_v17, 0.0  ;;  %v740_v16 = vsel %vm567_vm4, %v612_v10, %v653_v57 }
 0x15a   : > { %604 = vst.msk [vmem:[#allocation2 + $0x11] sm:$0xff] %vm567_vm4, %v595_v18 }
 0x15f   : > { %v2619_v20 = vld [vmem:[#allocation2 + $0x20] sm:$0xff] }
 0x160   : > { %v2621_v21 = vld [vmem:[#allocation2 + $0x21] sm:$0xff]  ;;  %686 = vrot.lane.b32.xlu1 %v2619_v20, %s2385_s9 }
 0x161   : > { %656 = vrot.lane.b32.xlu0 %v2621_v21, %s2388_s17  ;;  %v2265_v22 = vpop.f32.mrf.mxu0  ;;  %v2627_v25 = vld [vmem:[#allocation2 + $0x22] sm:$0xff]  ;;  %v2661_v38 = vld [vmem:[#allocation2 + $0x10] sm:$0xff] }
 0x162   : > { %v598_v23 = vmax.f32 %v2265_v22, 0.0  ;;  %v2667_v39 = vld [vmem:[#allocation2 + $0x11] sm:$0xff] }
 0x163   : > { %v538_v26 = vpop.f32.mrf.mxu0  ;;  %v952_v42 = vld [vmem:[#allocation2 + $0x12] sm:$0xff] }
 0x164   : > { %718 = vrot.lane.b32.xlu1 %v2621_v21, %s2389_s18  ;;  %607 = vst.msk [vmem:[#allocation2 + $0x41] sm:$0xff] %vm567_vm4, %v598_v23  ;;  %v597_v27 = vmax.f32 %v538_v26, 0.0 }
 0x165   : > { %979 = vrot.lane.b32.xlu0 %v2627_v25, %s2388_s17 }
 0x166   : > { %606 = vst.msk [vmem:[#allocation2 + $0x31] sm:$0xff] %vm567_vm4, %v597_v27 }
 0x168   : > { %1001 = vrot.lane.b32.xlu1 %v2621_v21, %s2385_s9 }
 0x169   : > { %1356 = vrot.lane.b32.xlu0 %v2621_v21, %s2388_s17 }
 0x16b   : > { %v2681_v19 = vld [vmem:[#allocation2 + $0x40] sm:$0xff] }
 0x16c   : > { %1033 = vrot.lane.b32.xlu1 %v2627_v25, %s2389_s18  ;;  %v2686_v45 = vld [vmem:[#allocation2 + $0x41] sm:$0xff] }
 0x16d   : > { %1678 = vrot.lane.b32.xlu0 %v2627_v25, %s2388_s17  ;;  %v2268_v33 = vpop.f32.mrf.mxu0  ;;  %v955_v14 = vld [vmem:[#allocation2 + $0x42] sm:$0xff]  ;;  %v2701_v46 = vld [vmem:[#allocation2 + $0x30] sm:$0xff] }
 0x16e   : > { %v600_v34 = vmax.f32 %v2268_v33, 0.0  ;;  %v2713_v49 = vld [vmem:[#allocation2 + $0x31] sm:$0xff] }
 0x16f   : > { %v548_v35 = vpop.f32.mrf.mxu0  ;;  %v2728_v53 = vld [vmem:[#allocation2 + $0x32] sm:$0xff] }
 0x170   : > { %1386 = vrot.lane.b32.xlu1 %v2619_v20, %s2385_s9  ;;  %609 = vst.msk [vmem:[#allocation2 + $0x61] sm:$0xff] %vm567_vm4, %v600_v34  ;;  %v599_v36 = vmax.f32 %v548_v35, 0.0  ;;  %v2135_v34 = vld [vmem:[%s3402_s2 + $0x30] sm:$0xff]  ;;  %v2858_v35 = vld [vmem:[%s3402_s2 + $0x78] sm:$0xff] }
 0x171   : > { %1700 = vrot.lane.b32.xlu0 %v2621_v21, %s2385_s9  ;;  %2332 = vmatprep.subr.mxu0 %v2858_v35 }
 0x172   : > { %608 = vst.msk [vmem:[#allocation2 + $0x51] sm:$0xff] %vm567_vm4, %v599_v36  ;;  %v1055_v36 = vsel %vm567_vm4, %v2567_v29, %v2763_v24 }
 0x174   : > { %1418 = vrot.lane.b32.xlu1 %v2621_v21, %s2389_s18 }
 0x175   : > { %684 = vrot.lane.b32.xlu0 %v2661_v38, %s2385_s9 }
 0x177   : > { %v2738_v54 = vld [vmem:[#allocation2 + $0x61] sm:$0xff] }
 0x178   : > { %654 = vrot.lane.b32.xlu1 %v2667_v39, %s2388_s17  ;;  %v964_v55 = vld [vmem:[#allocation2 + $0x62] sm:$0xff] }
 0x179   : > { %716 = vrot.lane.b32.xlu0 %v2667_v39, %s2389_s18  ;;  %v2271_v40 = vpop.f32.mrf.mxu0  ;;  %v2751_v37 = vld [vmem:[#allocation2 + $0x60] sm:$0xff]  ;;  %v2765_v58 = vld [vmem:[#allocation2 + $0x50] sm:$0xff] }
 0x17a   : > { %v602_v41 = vmax.f32 %v2271_v40, 0.0  ;;  %v2773_v60 = vld [vmem:[#allocation2 + $0x51] sm:$0xff] }
 0x17b   : > { %v558_v43 = vpop.f32.mrf.mxu0  ;;  %v956_v61 = vld [vmem:[#allocation2 + $0x52] sm:$0xff] }
 0x17c   : > { %977 = vrot.lane.b32.xlu1 %v952_v42, %s2388_s17  ;;  %611 = vst.msk [vmem:[#allocation2 + $0x81] sm:$0xff] %vm567_vm4, %v602_v41  ;;  %v601_v44 = vmax.f32 %v558_v43, 0.0  ;;  %v2134_v43 = vld [vmem:[%s3402_s2 + $0x28] sm:$0xff] }
 0x17d   : > { %999 = vrot.lane.b32.xlu0 %v2667_v39, %s2385_s9 }
 0x17e   : > { %610 = vst.msk [vmem:[#allocation2 + $0x71] sm:$0xff] %vm567_vm4, %v601_v44 }
 0x180   : > { %1354 = vrot.lane.b32.xlu1 %v2667_v39, %s2388_s17 }
 0x181   : > { %1031 = vrot.lane.b32.xlu0 %v952_v42, %s2389_s18 }
 0x183   : > { %v2802_v50 = vld [vmem:[#allocation2 + $0x81] sm:$0xff] }
 0x184   : > { %690 = vrot.lane.b32.xlu1 %v2681_v19, %s2385_s9  ;;  %v2812_v7 = vld [vmem:[#allocation2 + $0x82] sm:$0xff] }
 0x185   : > { %1676 = vrot.lane.b32.xlu0 %v952_v42, %s2388_s17  ;;  %v2820_v15 = vld [vmem:[#allocation2 + $0x80] sm:$0xff]  ;;  %v2822_v4 = vld [vmem:[#allocation2 + $0x70] sm:$0xff] }
 0x186   : > { %v2832_v26 = vld [vmem:[#allocation2 + $0x71] sm:$0xff] }
 0x187   : > { %v958_v47 = vld [vmem:[#allocation2 + $0x72] sm:$0xff] }
 0x188   : > { %722 = vrot.lane.b32.xlu1 %v2686_v45, %s2389_s18 }
 0x189   : > { %660 = vrot.lane.b32.xlu0 %v2686_v45, %s2388_s17 }
 0x18c   : > { %1005 = vrot.lane.b32.xlu1 %v2686_v45, %s2385_s9 }
 0x18d   : > { %983 = vrot.lane.b32.xlu0 %v955_v14, %s2388_s17 }
 0x190   : > { %1037 = vrot.lane.b32.xlu1 %v955_v14, %s2389_s18 }
 0x191   : > { %1360 = vrot.lane.b32.xlu0 %v2686_v45, %s2388_s17 }
 0x194   : > { %1390 = vrot.lane.b32.xlu1 %v2681_v19, %s2385_s9 }
 0x195   : > { %1682 = vrot.lane.b32.xlu0 %v955_v14, %s2388_s17 }
 0x198   : > { %1422 = vrot.lane.b32.xlu1 %v2686_v45, %s2389_s18 }
 0x199   : > { %688 = vrot.lane.b32.xlu0 %v2701_v46, %s2385_s9 }
 0x19c   : > { %1704 = vrot.lane.b32.xlu1 %v2686_v45, %s2385_s9 }
 0x19d   : > { %720 = vrot.lane.b32.xlu0 %v2713_v49, %s2389_s18 }
 0x1a0   : > { %1736 = vrot.lane.b32.xlu1 %v955_v14, %s2389_s18 }
 0x1a1   : > { %1003 = vrot.lane.b32.xlu0 %v2713_v49, %s2385_s9 }
 0x1a4   : > { %658 = vrot.lane.b32.xlu1 %v2713_v49, %s2388_s17 }
 0x1a5   : > { %1035 = vrot.lane.b32.xlu0 %v2728_v53, %s2389_s18 }
 0x1a8   : > { %981 = vrot.lane.b32.xlu1 %v2728_v53, %s2388_s17 }
 0x1a9   : > { %1388 = vrot.lane.b32.xlu0 %v2701_v46, %s2385_s9 }
 0x1ac   : > { %1420 = vrot.lane.b32.xlu1 %v2713_v49, %s2389_s18 }
 0x1ad   : > { %664 = vrot.lane.b32.xlu0 %v2738_v54, %s2388_s17 }
 0x1b0   : > { %1358 = vrot.lane.b32.xlu1 %v2713_v49, %s2388_s17 }
 0x1b1   : > { %1009 = vrot.lane.b32.xlu0 %v2738_v54, %s2385_s9 }
 0x1b4   : > { %1680 = vrot.lane.b32.xlu1 %v2728_v53, %s2388_s17 }
 0x1b5   : > { %1041 = vrot.lane.b32.xlu0 %v964_v55, %s2389_s18 }
 0x1b8   : > { %694 = vrot.lane.b32.xlu1 %v2751_v37, %s2385_s9 }
 0x1b9   : > { %987 = vrot.lane.b32.xlu0 %v964_v55, %s2388_s17 }
 0x1bc   : > { %726 = vrot.lane.b32.xlu1 %v2738_v54, %s2389_s18 }
 0x1bd   : > { %1364 = vrot.lane.b32.xlu0 %v2738_v54, %s2388_s17 }
 0x1c0   : > { %1394 = vrot.lane.b32.xlu1 %v2751_v37, %s2385_s9 }
 0x1c1   : > { %1686 = vrot.lane.b32.xlu0 %v964_v55, %s2388_s17 }
 0x1c4   : > { %1426 = vrot.lane.b32.xlu1 %v2738_v54, %s2389_s18 }
 0x1c5   : > { %692 = vrot.lane.b32.xlu0 %v2765_v58, %s2385_s9 }
 0x1c8   : > { %1708 = vrot.lane.b32.xlu1 %v2738_v54, %s2385_s9 }
 0x1c9   : > { %724 = vrot.lane.b32.xlu0 %v2773_v60, %s2389_s18 }
 0x1cc   : > { %1740 = vrot.lane.b32.xlu1 %v964_v55, %s2389_s18 }
 0x1cd   : > { %985 = vrot.lane.b32.xlu0 %v956_v61, %s2388_s17 }
 0x1d0   : > { %662 = vrot.lane.b32.xlu1 %v2773_v60, %s2388_s17 }
 0x1d1   : > { %1392 = vrot.lane.b32.xlu0 %v2765_v58, %s2385_s9 }
 0x1d2   : > { %v687_v63 = vpop.permute.xlu1 %686 }
 0x1d3   : > { %v2787_v0 = vpop.permute.xlu0 %656 }
 0x1d4   : > { %1007 = vrot.lane.b32.xlu1 %v2773_v60, %s2385_s9 }
 0x1d5   : > { %1362 = vrot.lane.b32.xlu0 %v2773_v60, %s2388_s17 }
 0x1d6   : > { %v719_v1 = vpop.permute.xlu1 %718 }
 0x1d7   : > { %v2793_v2 = vpop.permute.xlu0 %979 }
 0x1d8   : > { %1039 = vrot.lane.b32.xlu1 %v956_v61, %s2389_s18 }
 0x1d9   : > { %1706 = vrot.lane.b32.xlu0 %v2773_v60, %s2385_s9 }
 0x1da   : > { %v2798_v56 = vpop.permute.xlu1 %1001 }
 0x1db   : > { %v2800_v3 = vpop.permute.xlu0 %1356 }
 0x1dc   : > { %1424 = vrot.lane.b32.xlu1 %v2773_v60, %s2389_s18 }
 0x1dd   : > { %1013 = vrot.lane.b32.xlu0 %v2802_v50, %s2385_s9 }
 0x1de   : > { %v2808_v5 = vpop.permute.xlu1 %1033 }
 0x1df   : > { %v2810_v6 = vpop.permute.xlu0 %1678 }
 0x1e0   : > { %1738 = vrot.lane.b32.xlu1 %v956_v61, %s2389_s18 }
 0x1e1   : > { %1045 = vrot.lane.b32.xlu0 %v2812_v7, %s2389_s18 }
 0x1e2   : > { %v1387_v8 = vpop.permute.xlu1 %1386 }
 0x1e3   : > { %v1701_v9 = vpop.permute.xlu0 %1700 }
 0x1e4   : > { %1684 = vrot.lane.b32.xlu1 %v956_v61, %s2388_s17 }
 0x1e5   : > { %1368 = vrot.lane.b32.xlu0 %v2802_v50, %s2388_s17 }
 0x1e6   : > { %v1419_v12 = vpop.permute.xlu1 %1418 }
 0x1e7   : > { %v685_v13 = vpop.permute.xlu0 %684 }
 0x1e8   : > { %698 = vrot.lane.b32.xlu1 %v2820_v15, %s2385_s9  ;;  %v748_v17 = vsel %vm402_vm0, %v740_v16, %v685_v13 }
 0x1e9   : > { %696 = vrot.lane.b32.xlu0 %v2822_v4, %s2385_s9 }
 0x1ea   : > { %v655_v18 = vpop.permute.xlu1 %654 }
 0x1eb   : > { %v717_v22 = vpop.permute.xlu0 %716  ;;  %v741_v23 = vsel %vm567_vm4, %v2661_v38, %v655_v18 }
 0x1ec   : > { %v757_v27 = vsel %vm756_vm10, %v748_v17, %v717_v22  ;;  %v749_v30 = vsel %vm402_vm0, %v741_v23, %v687_v63  ;;  %730 = vrot.lane.b32.xlu1 %v2802_v50, %s2389_s18 }
 0x1ed   : > { %728 = vrot.lane.b32.xlu0 %v2832_v26, %s2389_s18  ;;  %2280 = vmatprep.mubr.msk.f32.mxu1 %vm411_vm7, %v757_v27  ;;  %v758_v31 = vsel %vm756_vm10, %v749_v30, %v719_v1 }
 0x1ee   : > { %v2845_v32 = vpop.permute.xlu1 %977  ;;  %2281 = vmatmul.mubr.msk.f32.vlgmr.msra.gmra.mxu1 %vm411_vm7, %v758_v31 }
 0x1ef   : > { %v1000_v33 = vpop.permute.xlu0 %999  ;;  %2293 = vmatpush3.msra.mxu1 %v2136_v28 }
 0x1f0   : > { %1398 = vrot.lane.b32.xlu1 %v2820_v15, %s2385_s9  ;;  %2294 = vmatprep.subr.mxu1 %v2135_v34  ;;  %v1063_v40 = vsel %vm402_vm0, %v1055_v36, %v1000_v33  ;;  %v1667_v36 = vld [vmem:[#allocation2 + $0x92] sm:$0xff] }
 0x1f1   : > { %1702 = vrot.lane.b32.xlu0 %v2713_v49, %s2385_s9  ;;  %2295 = vmatpush3.msra.mxu1 %v2135_v34 }
 0x1f2   : > { %v1355_v41 = vpop.permute.xlu1 %1354  ;;  %2296 = vmatprep.subr.mxu1 %v2134_v43 }
 0x1f3   : > { %v1032_v42 = vpop.permute.xlu0 %1031  ;;  %v1442_v44 = vsel %vm567_vm4, %v2661_v38, %v1355_v41  ;;  %2297 = vmatpush3.msra.mxu1 %v2134_v43  ;;  %v1443_v43 = vsel %vm567_vm4, %v2619_v20, %v2800_v3 }
 0x1f4   : > { %v2871_v14 = vsel %vm756_vm10, %v1063_v40, %v1032_v42  ;;  %v1450_v29 = vsel %vm402_vm0, %v1442_v44, %v1387_v8  ;;  %1430 = vrot.lane.b32.xlu1 %v2802_v50, %s2389_s18  ;;  %2298 = vmatprep.subr.mxu1 %v2133_v48 }
 0x1f5   : > { %989 = vrot.lane.b32.xlu0 %v958_v47, %s2388_s17  ;;  %v1458_v51 = vsel %vm756_vm10, %v1450_v29, %v1419_v12  ;;  %2299 = vmatpush3.msra.mxu1 %v2133_v48 }
 0x1f6   : > { %v691_v38 = vpop.permute.xlu1 %690  ;;  %2320 = vmatprep.mubr.msk.f32.mxu0 %vm411_vm7, %v1458_v51  ;;  %2352 = vmatprep.subr.mxu1 %v2858_v35 }
 0x1f7   : > { %v1677_v52 = vpop.permute.xlu0 %1676 }
 0x1f8   : > { %v1756_v55 = vsel %vm567_vm4, %v2667_v39, %v1677_v52  ;;  %1690 = vrot.lane.b32.xlu1 %v2812_v7, %s2388_s17 }
 0x1f9   : > { %1396 = vrot.lane.b32.xlu0 %v2822_v4, %s2385_s9  ;;  %v2889_v57 = vsel %vm402_vm0, %v1756_v55, %v1701_v9 }
 0x1fa   : > { %v723_v24 = vpop.permute.xlu1 %722 }
 0x1fb   : > { %v2892_v61 = vpop.permute.xlu0 %660 }
 0x1fc   : > { %666 = vrot.lane.b32.xlu1 %v2832_v26, %s2388_s17 }
 0x1fd   : > { %1428 = vrot.lane.b32.xlu0 %v2832_v26, %s2389_s18 }
 0x1fe   : > { %v1006_v63 = vpop.permute.xlu1 %1005 }
 0x1ff   : > { %v2898_v1 = vpop.permute.xlu0 %983 }
 0x200   : > { %1712 = vrot.lane.b32.xlu1 %v2802_v50, %s2385_s9 }
 0x201   : > { %1366 = vrot.lane.b32.xlu0 %v2832_v26, %s2388_s17 }
 0x202   : > { %v1038_v8 = vpop.permute.xlu1 %1037 }
 0x203   : > { %v2904_v9 = vpop.permute.xlu0 %1360 }
 0x204   : > { %1714 = vrot.lane.b32.xlu1 %v2613_v11, %s2385_s9  ;;  %v742_v11 = vsel %vm567_vm4, %v2619_v20, %v2787_v0  ;;  %v2965_v20 = vld [vmem:[%s3402_s2 + $0x68] sm:$0xff] }
 0x205   : > { %1710 = vrot.lane.b32.xlu0 %v2832_v26, %s2385_s9 }
 0x206   : > { %v1391_v10 = vpop.permute.xlu1 %1390 }
 0x207   : > { %v2910_v12 = vpop.permute.xlu0 %1682 }
 0x208   : > { %1011 = vrot.lane.b32.xlu1 %v2832_v26, %s2385_s9 }
 0x209   : > { %1732 = vrot.lane.b32.xlu0 %v2627_v25, %s2389_s18 }
 0x20a   : > { %v1423_v13 = vpop.permute.xlu1 %1422 }
 0x20b   : > { %v689_v16 = vpop.permute.xlu0 %688 }
 0x20c   : > { %1043 = vrot.lane.b32.xlu1 %v958_v47, %s2389_s18  ;;  %v750_v17 = vsel %vm402_vm0, %v742_v11, %v689_v16 }
 0x20d   : > { %1734 = vrot.lane.b32.xlu0 %v2728_v53, %s2389_s18  ;;  %v1057_v53 = vsel %vm567_vm4, %v2621_v21, %v2793_v2 }
 0x20e   : > { %v1705_v18 = vpop.permute.xlu1 %1704 }
 0x20f   : > { %v721_v22 = vpop.permute.xlu0 %720 }
 0x210   : > { %v759_v25 = vsel %vm756_vm10, %v750_v17, %v721_v22  ;;  %1744 = vrot.lane.b32.xlu1 %v2812_v7, %s2389_s18 }
 0x211   : > { %2283 = vmatprep.mubr.msk.f32.mxu1 %vm411_vm7, %v759_v25 }
 0x212   : > { %v1737_v23 = vpop.permute.xlu1 %1736 }
 0x213   : > { %v1004_v27 = vpop.permute.xlu0 %1003 }
 0x214   : > { %1742 = vrot.lane.b32.xlu1 %v958_v47, %s2389_s18  ;;  %v1065_v0 = vsel %vm402_vm0, %v1057_v53, %v1004_v27 }
 0x216   : > { %v659_v28 = vpop.permute.xlu1 %658 }
 0x217   : > { %v1036_v30 = vpop.permute.xlu0 %1035  ;;  %v743_v31 = vsel %vm567_vm4, %v2701_v46, %v659_v28 }
 0x218   : > { %v2935_v33 = vsel %vm756_vm10, %v1065_v0, %v1036_v30  ;;  %v751_v7 = vsel %vm402_vm0, %v743_v31, %v691_v38  ;;  %1688 = vrot.lane.b32.xlu1 %v958_v47, %s2388_s17  ;;  %v2958_v38 = vld [vmem:[%s3402_s2 + $0x70] sm:$0xff] }
 0x219   : > { %v760_v34 = vsel %vm756_vm10, %v751_v7, %v723_v24  ;;  %v2974_v24 = vld [vmem:[%s3402_s2 + $0x60] sm:$0xff] }
 0x21a   : > { %v982_v40 = vpop.permute.xlu1 %981  ;;  %2284 = vmatmul.mubr.msk.f32.gmra.mxu1 %vm411_vm7, %v760_v34 }
 0x21b   : > { %v1389_v2 = vpop.permute.xlu0 %1388  ;;  %v1058_v41 = vsel %vm567_vm4, %v2713_v49, %v982_v40 }
 0x21c   : > { %v1066_v42 = vsel %vm402_vm0, %v1058_v41, %v1006_v63  ;;  %1746 = vrot.lane.b32.xlu1 %v1667_v36, %s2389_s18  ;;  %v1451_v47 = vsel %vm402_vm0, %v1443_v43, %v1389_v2 }
 0x21d   : > { %v2949_v44 = vsel %vm756_vm10, %v1066_v42, %v1038_v8 }
 0x21e   : > { %v1421_v29 = vpop.permute.xlu1 %1420 }
 0x21f   : > { %v2952_v48 = vpop.permute.xlu0 %664  ;;  %v1459_v51 = vsel %vm756_vm10, %v1451_v47, %v1421_v29 }
 0x220   : > { %2321 = vmatmul.mubr.msk.f32.vlgmr.msra.gmra.mxu0 %vm411_vm7, %v1459_v51 }
 0x221   : > { %2333 = vmatpush3.msra.mxu0 %v2858_v35 }
 0x222   : > { %v1359_v3 = vpop.permute.xlu1 %1358  ;;  %2334 = vmatprep.subr.mxu0 %v2958_v38 }
 0x223   : > { %v1010_v52 = vpop.permute.xlu0 %1009  ;;  %v1444_v55 = vsel %vm567_vm4, %v2701_v46, %v1359_v3  ;;  %2335 = vmatpush3.msra.mxu0 %v2958_v38 }
 0x224   : > { %v1452_v63 = vsel %vm402_vm0, %v1444_v55, %v1391_v10  ;;  %2336 = vmatprep.subr.mxu0 %v2965_v20 }
 0x225   : > { %v1460_v8 = vsel %vm756_vm10, %v1452_v63, %v1423_v13  ;;  %2337 = vmatpush3.msra.mxu0 %v2965_v20 }
 0x226   : > { %v1681_v16 = vpop.permute.xlu1 %1680  ;;  %2323 = vmatprep.mubr.msk.f32.mxu0 %vm411_vm7, %v1460_v8  ;;  %2338 = vmatprep.subr.mxu0 %v2974_v24  ;;  %v1445_v8 = vsel %vm567_vm4, %v2681_v19, %v2904_v9 }
 0x227   : > { %v1042_v11 = vpop.permute.xlu0 %1041  ;;  %v1758_v46 = vsel %vm567_vm4, %v2713_v49, %v1681_v16  ;;  %2339 = vmatpush3.msra.mxu0 %v2974_v24  ;;  %v744_v49 = vsel %vm567_vm4, %v2681_v19, %v2892_v61 }
 0x228   : > { %v1766_v17 = vsel %vm402_vm0, %v1758_v46, %v1705_v18 }
 0x229   : > { %v2987_v10 = vsel %vm756_vm10, %v1766_v17, %v1737_v23 }
 0x22a   : > { %v695_v22 = vpop.permute.xlu1 %694 }
 0x22b   : > { %v2989_v13 = vpop.permute.xlu0 %987 }
 0x22e   : > { %v727_v25 = vpop.permute.xlu1 %726 }
 0x22f   : > { %v1365_v27 = vpop.permute.xlu0 %1364 }
 0x232   : > { %v1395_v53 = vpop.permute.xlu1 %1394 }
 0x233   : > { %v2991_v0 = vpop.permute.xlu0 %1686 }
 0x236   : > { %v1427_v28 = vpop.permute.xlu1 %1426 }
 0x237   : > { %v693_v30 = vpop.permute.xlu0 %692 }
 0x238   : > { %v752_v31 = vsel %vm402_vm0, %v744_v49, %v693_v30 }
 0x23a   : > { %v1709_v18 = vpop.permute.xlu1 %1708 }
 0x23b   : > { %v725_v7 = vpop.permute.xlu0 %724 }
 0x23c   : > { %v761_v23 = vsel %vm756_vm10, %v752_v31, %v725_v7 }
 0x23d   : > { %2286 = vmatprep.mubr.msk.f32.mxu1 %vm411_vm7, %v761_v23 }
 0x23e   : > { %v1741_v34 = vpop.permute.xlu1 %1740 }
 0x23f   : > { %v986_v36 = vpop.permute.xlu0 %985 }
 0x240   : > { %v1060_v40 = vsel %vm567_vm4, %v2773_v60, %v986_v36 }
 0x241   : > { %v1068_v2 = vsel %vm402_vm0, %v1060_v40, %v1010_v52 }
 0x242   : > { %v3003_v41 = vsel %vm756_vm10, %v1068_v2, %v1042_v11  ;;  %v663_v42 = vpop.permute.xlu1 %662 }
 0x243   : > { %v1393_v61 = vpop.permute.xlu0 %1392  ;;  %v745_v43 = vsel %vm567_vm4, %v2765_v58, %v663_v42 }
 0x244   : > { %v753_v47 = vsel %vm402_vm0, %v745_v43, %v695_v22  ;;  %v1453_v11 = vsel %vm402_vm0, %v1445_v8, %v1393_v61  ;;  %v1056_v8 = vsel %vm567_vm4, %v2667_v39, %v2845_v32 }
 0x245   : > { %v762_v29 = vsel %vm756_vm10, %v753_v47, %v727_v25 }
 0x246   : > { %v3009_v51 = vpop.permute.xlu1 %1007  ;;  %2287 = vmatmul.mubr.msk.f32.gmra.mxu1 %vm411_vm7, %v762_v29  ;;  %v1447_v29 = vsel %vm567_vm4, %v2751_v37, %v1365_v27  ;;  %v1064_v27 = vsel %vm402_vm0, %v1056_v8, %v2798_v56 }
 0x247   : > { %v1363_v3 = vpop.permute.xlu0 %1362 }
 0x248   : > { %v1446_v52 = vsel %vm567_vm4, %v2765_v58, %v1363_v3 }
 0x249   : > { %v1454_v16 = vsel %vm402_vm0, %v1446_v52, %v1395_v53 }
 0x24a   : > { %v3014_v55 = vpop.permute.xlu1 %1039  ;;  %v1462_v58 = vsel %vm756_vm10, %v1454_v16, %v1427_v28  ;;  %v746_v28 = vsel %vm567_vm4, %v2751_v37, %v2952_v48 }
 0x24b   : > { %v3016_v63 = vpop.permute.xlu0 %1706 }
 0x24e   : > { %v1425_v46 = vpop.permute.xlu1 %1424 }
 0x24f   : > { %v3023_v17 = vpop.permute.xlu0 %1013  ;;  %v1461_v22 = vsel %vm756_vm10, %v1453_v11, %v1425_v46 }
 0x250   : > { %2324 = vmatmul.mubr.msk.f32.gmra.mxu0 %vm411_vm7, %v1461_v22 }
 0x251   : > { %2326 = vmatprep.mubr.msk.f32.mxu0 %vm411_vm7, %v1462_v58 }
 0x252   : > { %v3029_v25 = vpop.permute.xlu1 %1738 }
 0x253   : > { %v3031_v30 = vpop.permute.xlu0 %1045 }
 0x256   : > { %v1685_v19 = vpop.permute.xlu1 %1684 }
 0x257   : > { %v1369_v9 = vpop.permute.xlu0 %1368  ;;  %v1760_v53 = vsel %vm567_vm4, %v2773_v60, %v1685_v19 }
 0x258   : > { %v1768_v49 = vsel %vm402_vm0, %v1760_v53, %v1709_v18  ;;  %v1449_v46 = vsel %vm567_vm4, %v2820_v15, %v1369_v9  ;;  %v1072_v9 = vsel %vm756_vm10, %v1064_v27, %v2808_v5  ;;  %v1059_v5 = vsel %vm567_vm4, %v2686_v45, %v2898_v1 }
 0x259   : > { %v3037_v31 = vsel %vm756_vm10, %v1768_v49, %v1741_v34  ;;  %v1457_v32 = vsel %vm402_vm0, %v1449_v46, %v2771_v59 }
 0x25a   : > { %v699_v7 = vpop.permute.xlu1 %698  ;;  %v1465_v59 = vsel %vm756_vm10, %v1457_v32, %v2781_v62 }
 0x25b   : > { %v697_v23 = vpop.permute.xlu0 %696 }
 0x25c   : > { %v754_v36 = vsel %vm402_vm0, %v746_v28, %v697_v23 }
 0x25e   : > { %v731_v40 = vpop.permute.xlu1 %730 }
 0x25f   : > { %v729_v2 = vpop.permute.xlu0 %728 }
 0x260   : > { %v763_v42 = vsel %vm756_vm10, %v754_v36, %v729_v2 }
 0x261   : > { %2289 = vmatprep.mubr.msk.f32.mxu1 %vm411_vm7, %v763_v42 }
 0x262   : > { %v1399_v60 = vpop.permute.xlu1 %1398 }
 0x263   : > { %v1703_v61 = vpop.permute.xlu0 %1702 }
 0x266   : > { %v1431_v18 = vpop.permute.xlu1 %1430 }
 0x267   : > { %v990_v43 = vpop.permute.xlu0 %989 }
 0x26a   : > { %v3045_v34 = vpop.permute.xlu1 %1690 }
 0x26b   : > { %v1397_v47 = vpop.permute.xlu0 %1396  ;;  %v1763_v36 = vsel %vm567_vm4, %v2802_v50, %v3045_v34 }
 0x26c   : > { %v1455_v48 = vsel %vm402_vm0, %v1447_v29, %v1397_v47 }
 0x26e   : > { %v667_v3 = vpop.permute.xlu1 %666 }
 0x26f   : > { %v1429_v52 = vpop.permute.xlu0 %1428  ;;  %v747_v16 = vsel %vm567_vm4, %v2822_v4, %v667_v3 }
 0x270   : > { %v1463_v11 = vsel %vm756_vm10, %v1455_v48, %v1429_v52  ;;  %v755_v22 = vsel %vm402_vm0, %v747_v16, %v699_v7  ;;  %v1062_v7 = vsel %vm567_vm4, %v2832_v26, %v990_v43 }
 0x271   : > { %2327 = vmatmul.mubr.msk.f32.gmra.mxu0 %vm411_vm7, %v1463_v11  ;;  %v764_v37 = vsel %vm756_vm10, %v755_v22, %v731_v40 }
 0x272   : > { %v1713_v58 = vpop.permute.xlu1 %1712  ;;  %2290 = vmatmul.mubr.msk.f32.gmra.mxu1 %vm411_vm7, %v764_v37 }
 0x273   : > { %v1367_v39 = vpop.permute.xlu0 %1366  ;;  %2300 = vmatprep.mubr.msk.f32.mxu1 %vm411_vm7, %v2871_v14 }
 0x274   : > { %v1448_v19 = vsel %vm567_vm4, %v2822_v4, %v1367_v39  ;;  %v1067_v4 = vsel %vm402_vm0, %v1059_v5, %v3009_v51  ;;  %v1070_v51 = vsel %vm402_vm0, %v1062_v7, %v3023_v17 }
 0x275   : > { %v1456_v15 = vsel %vm402_vm0, %v1448_v19, %v1399_v60  ;;  %v1075_v14 = vsel %vm756_vm10, %v1067_v4, %v3014_v55 }
 0x276   : > { %v1464_v56 = vsel %vm756_vm10, %v1456_v15, %v1431_v18  ;;  %v1715_v53 = vpop.permute.xlu1 %1714  ;;  %2301 = vmatmul.mubr.msk.f32.vlgmr.msra.gmra.mxu1 %vm411_vm7, %v1072_v9 }
 0x277   : > { %2329 = vmatprep.mubr.msk.f32.mxu0 %vm411_vm7, %v1464_v56  ;;  %v1711_v49 = vpop.permute.xlu0 %1710  ;;  %2303 = vmatprep.mubr.msk.f32.mxu1 %vm411_vm7, %v2935_v33 }
 0x278   : > { %2330 = vmatmul.mubr.msk.f32.gmra.mxu0 %vm411_vm7, %v1465_v59  ;;  %2356 = vmatpush3.msra.mxu1 %v2858_v35  ;;  %v1757_v35 = vsel %vm567_vm4, %v2621_v21, %v2810_v6 }
 0x279   : > { %2353 = vmatprep.subr.mxu1 %v2958_v38 }
 0x27a   : > { %v1012_v62 = vpop.permute.xlu1 %1011  ;;  %2304 = vmatmul.mubr.msk.f32.gmra.mxu1 %vm411_vm7, %v2949_v44  ;;  %v1061_v44 = vsel %vm567_vm4, %v2738_v54, %v2989_v13 }
 0x27b   : > { %v1733_v33 = vpop.permute.xlu0 %1732  ;;  %2306 = vmatprep.mubr.msk.f32.mxu1 %vm411_vm7, %v1075_v14  ;;  %2357 = vmatpush3.msra.mxu1 %v2958_v38  ;;  %v1069_v38 = vsel %vm402_vm0, %v1061_v44, %v1012_v62 }
 0x27c   : > { %v1772_v1 = vsel %vm756_vm10, %v2889_v57, %v1733_v33  ;;  %2354 = vmatprep.subr.mxu1 %v2965_v20  ;;  %v1765_v57 = vsel %vm402_vm0, %v1757_v35, %v1703_v61 }
 0x27d   : > { %2340 = vmatprep.mubr.msk.f32.mxu0 %vm411_vm7, %v1772_v1  ;;  %2358 = vmatpush3.msra.mxu1 %v2965_v20  ;;  %v1078_v20 = vsel %vm756_vm10, %v1070_v51, %v3031_v30  ;;  %v1761_v30 = vsel %vm567_vm4, %v2738_v54, %v2991_v0  ;;  %v1771_v0 = vsel %vm402_vm0, %v1763_v36, %v1715_v53 }
 0x27e   : > { %v1044_v55 = vpop.permute.xlu1 %1043  ;;  %2307 = vmatmul.mubr.msk.f32.gmra.mxu1 %vm411_vm7, %v3003_v41  ;;  %2355 = vmatprep.subr.mxu1 %v2974_v24  ;;  %v1759_v41 = vsel %vm567_vm4, %v2686_v45, %v2910_v12  ;;  %v1769_v45 = vsel %vm402_vm0, %v1761_v30, %v1711_v49 }
 0x27f   : > { %v1735_v23 = vpop.permute.xlu0 %1734  ;;  %v1077_v21 = vsel %vm756_vm10, %v1069_v38, %v1044_v55  ;;  %2359 = vmatpush3.msra.mxu1 %v2974_v24  ;;  %v1767_v24 = vsel %vm402_vm0, %v1759_v41, %v3016_v63 }
 0x280   : > { %v1773_v6 = vsel %vm756_vm10, %v1765_v57, %v1735_v23  ;;  %2309 = vmatprep.mubr.msk.f32.mxu1 %vm411_vm7, %v1077_v21  ;;  %v1775_v17 = vsel %vm756_vm10, %v1767_v24, %v3029_v25 }
 0x281   : > { %2341 = vmatmul.mubr.msk.f32.vlgmr.msra.gmra.mxu0 %vm411_vm7, %v1773_v6 }
 0x282   : > { %v1745_v13 = vpop.permute.xlu1 %1744  ;;  %2310 = vmatmul.mubr.msk.f32.gmra.mxu1 %vm411_vm7, %v1078_v20 }
 0x283   : > { %2343 = vmatprep.mubr.msk.f32.mxu1 %vm411_vm7, %v2987_v10 }
 0x286   : > { %v1743_v28 = vpop.permute.xlu1 %1742  ;;  %2344 = vmatmul.mubr.msk.f32.vlgmr.msra.gmra.mxu1 %vm411_vm7, %v1775_v17 }
 0x287   : > { %2346 = vmatprep.mubr.msk.f32.mxu1 %vm411_vm7, %v3037_v31  ;;  %v1777_v12 = vsel %vm756_vm10, %v1769_v45, %v1743_v28 }
 0x28a   : > { %v1689_v10 = vpop.permute.xlu1 %1688  ;;  %2347 = vmatmul.mubr.msk.f32.gmra.mxu1 %vm411_vm7, %v1777_v12 }
 0x28b   : > { %v1762_v63 = vsel %vm567_vm4, %v2832_v26, %v1689_v10 }
 0x28c   : > { %v1770_v25 = vsel %vm402_vm0, %v1762_v63, %v1713_v58 }
 0x28d   : > { %v1778_v54 = vsel %vm756_vm10, %v1770_v25, %v1745_v13 }
 0x28e   : > { %v1747_v31 = vpop.permute.xlu1 %1746  ;;  %2349 = vmatprep.mubr.msk.f32.mxu1 %vm411_vm7, %v1778_v54 }
 0x28f   : > { %v1779_v40 = vsel %vm756_vm10, %v1771_v0, %v1747_v31 }
 0x290   : > { %2350 = vmatmul.mubr.msk.f32.gmra.mxu1 %vm411_vm7, %v1779_v40 }
 0x2ae   : > { %v3151_v2 = vpop.f32.mrf.mxu1 }
 0x2af   : > { %v900_v29 = vsel %vm898_vm11, %v3151_v2, 0.0  ;;  %v922_v48 = vmul.f32 %v3151_v2, %v3151_v2 }
 0x2b0   : > { %v3153_v26 = vpop.f32.mrf.mxu1 }
 0x2b1   : > { %v899_v18 = vsel %vm898_vm11, %v3153_v26, 0.0  ;;  %v921_v43 = vmul.f32 %v3153_v26, %v3153_v26  ;;  %v930_v37 = vsel %vm898_vm11, %v922_v48, 0.0 }
 0x2b2   : > { %v901_v8 = vadd.f32 %v900_v29, %v899_v18 }
 0x2b3   : > { %v929_v16 = vsel %vm898_vm11, %v921_v43, 0.0 }
 0x2b4   : > { %v931_v39 = vadd.f32 %v930_v37, %v929_v16 }
 0x2da   : > { %v3155_v42 = vpop.f32.mrf.mxu1 }
 0x2db   : > { %v904_v32 = vsel %vm898_vm11, %v3155_v42, 0.0  ;;  %v924_v19 = vmul.f32 %v3155_v42, %v3155_v42 }
 0x2dc   : > { %v3159_v50 = vpop.f32.mrf.mxu1 }
 0x2dd   : > { %v902_v3 = vsel %vm898_vm11, %v3159_v50, 0.0  ;;  %v923_v52 = vmul.f32 %v3159_v50, %v3159_v50  ;;  %v934_v44 = vsel %vm898_vm11, %v924_v19, 0.0 }
 0x2de   : > { %v903_v11 = vadd.f32 %v902_v3, %v901_v8 }
 0x2df   : > { %v932_v27 = vsel %vm898_vm11, %v923_v52, 0.0 }
 0x2e0   : > { %v3157_v60 = vpop.f32.mrf.mxu0  ;;  %v933_v59 = vadd.f32 %v932_v27, %v931_v39  ;;  %v905_v5 = vadd.f32 %v904_v32, %v903_v11 }
 0x2e1   : > { %v1623_v15 = vmul.f32 %v3157_v60, %v3157_v60  ;;  %v1601_v4 = vsel %vm898_vm11, %v3157_v60, 0.0 }
 0x2e2   : > { %v3161_v61 = vpop.f32.mrf.mxu0  ;;  %v935_v23 = vadd.f32 %v934_v44, %v933_v59 }
 0x2e3   : > { %v1622_v58 = vmul.f32 %v3161_v61, %v3161_v61  ;;  %v1600_v9 = vsel %vm898_vm11, %v3161_v61, 0.0  ;;  %v1631_v57 = vsel %vm898_vm11, %v1623_v15, 0.0 }
 0x2e4   : > { %v1602_v7 = vadd.f32 %v1601_v4, %v1600_v9 }
 0x2e5   : > { %v1630_v14 = vsel %vm898_vm11, %v1622_v58, 0.0 }
 0x2e6   : > { %v1632_v55 = vadd.f32 %v1631_v57, %v1630_v14 }
 0x306   : > { %v3167_v34 = vpop.f32.mrf.mxu1 }
 0x307   : > { %v926_v62 = vmul.f32 %v3167_v34, %v3167_v34  ;;  %v908_v41 = vsel %vm898_vm11, %v3167_v34, 0.0 }
 0x308   : > { %v3180_v46 = vpop.f32.mrf.mxu1 }
 0x309   : > { %v906_v56 = vsel %vm898_vm11, %v3180_v46, 0.0  ;;  %v925_v53 = vmul.f32 %v3180_v46, %v3180_v46  ;;  %v938_v24 = vsel %vm898_vm11, %v926_v62, 0.0 }
 0x30a   : > { %v907_v1 = vadd.f32 %v906_v56, %v905_v5 }
 0x30b   : > { %v936_v51 = vsel %vm898_vm11, %v925_v53, 0.0 }
 0x30c   : > { %v937_v17 = vadd.f32 %v936_v51, %v935_v23  ;;  %v909_v12 = vadd.f32 %v908_v41, %v907_v1 }
 0x30e   : > { %v939_v37 = vadd.f32 %v938_v24, %v937_v17 }
 0x310   : > { %v3169_v47 = vpop.f32.mrf.mxu0 }
 0x311   : > { %v1625_v21 = vmul.f32 %v3169_v47, %v3169_v47  ;;  %v1605_v10 = vsel %vm898_vm11, %v3169_v47, 0.0 }
 0x312   : > { %v3182_v22 = vpop.f32.mrf.mxu0 }
 0x313   : > { %v1624_v49 = vmul.f32 %v3182_v22, %v3182_v22  ;;  %v1603_v33 = vsel %vm898_vm11, %v3182_v22, 0.0  ;;  %v1635_v54 = vsel %vm898_vm11, %v1625_v21, 0.0 }
 0x314   : > { %v1604_v6 = vadd.f32 %v1603_v33, %v1602_v7 }
 0x315   : > { %v1633_v38 = vsel %vm898_vm11, %v1624_v49, 0.0 }
 0x316   : > { %v1634_v28 = vadd.f32 %v1633_v38, %v1632_v55  ;;  %v1606_v31 = vadd.f32 %v1605_v10, %v1604_v6 }
 0x318   : > { %v1636_v16 = vadd.f32 %v1635_v54, %v1634_v28 }
 0x331   : > { %v3209_v35 = vpop.f32.mrf.mxu0 }
 0x332   : > { %v3217_v20 = vpop.f32.mrf.mxu1  ;;  %v1627_v0 = vmul.f32 %v3209_v35, %v3209_v35  ;;  %v1609_v58 = vsel %vm898_vm11, %v3209_v35, 0.0 }
 0x333   : > { %v3219_v13 = vpop.f32.mrf.mxu0  ;;  %v912_v43 = vsel %vm898_vm11, %v3217_v20, 0.0  ;;  %v928_v29 = vmul.f32 %v3217_v20, %v3217_v20 }
 0x334   : > { %v1626_v30 = vmul.f32 %v3219_v13, %v3219_v13  ;;  %v3226_v45 = vpop.f32.mrf.mxu1  ;;  %v1607_v63 = vsel %vm898_vm11, %v3219_v13, 0.0  ;;  %v1639_v15 = vsel %vm898_vm11, %v1627_v0, 0.0 }
 0x335   : > { %v910_v25 = vsel %vm898_vm11, %v3226_v45, 0.0  ;;  %v927_v36 = vmul.f32 %v3226_v45, %v3226_v45  ;;  %v1608_v8 = vadd.f32 %v1607_v63, %v1606_v31  ;;  %v942_v59 = vsel %vm898_vm11, %v928_v29, 0.0 }
 0x336   : > { %v911_v40 = vadd.f32 %v910_v25, %v909_v12  ;;  %v2302_v18 = vpop.f32.mrf.mxu1  ;;  %v1637_v48 = vsel %vm898_vm11, %v1626_v30, 0.0 }
 0x337   : > { %v940_v3 = vsel %vm898_vm11, %v927_v36, 0.0  ;;  %1275 = vrot.lane.b32.xlu1 %v2302_v18, %s2390_s29  ;;  %v1638_v9 = vadd.f32 %v1637_v48, %v1636_v16  ;;  %v1236_v53 = vmul.f32 %v2302_v18, %v2302_v18  ;;  %v1214_v4 = vsel %vm898_vm11, %v2302_v18, 0.0 }
 0x338   : > { %v3246_v52 = vpop.f32.mrf.mxu0  ;;  %v913_v11 = vadd.f32 %v912_v43, %v911_v40  ;;  %v1174_v27 = vpop.f32.mrf.mxu1  ;;  %v941_v56 = vadd.f32 %v940_v3, %v939_v37  ;;  %v1610_v1 = vadd.f32 %v1609_v58, %v1608_v8 }
 0x339   : > { %v1213_v39 = vsel %vm898_vm11, %v1174_v27, 0.0  ;;  %v1235_v32 = vmul.f32 %v1174_v27, %v1174_v27  ;;  %1273 = vrot.lane.b32.xlu0 %v1174_v27, %s2390_s29  ;;  %v1629_v62 = vmul.f32 %v3246_v52, %v3246_v52  ;;  %v1244_v21 = vsel %vm898_vm11, %v1236_v53, 0.0 }
 0x33a   : > { %v3252_v19 = vpop.f32.mrf.mxu0  ;;  %v2305_v49 = vpop.f32.mrf.mxu1  ;;  %v914_v5 = vrot.slane %v913_v11, 4  ;;  %v1215_v33 = vadd.f32 %v1214_v4, %v1213_v39  ;;  %v943_v23 = vadd.f32 %v942_v59, %v941_v56  ;;  %v1640_v6 = vadd.f32 %v1639_v15, %v1638_v9 }
 0x33b   : > { %v1628_v14 = vmul.f32 %v3252_v19, %v3252_v19  ;;  %v1243_v7 = vsel %vm898_vm11, %v1235_v32, 0.0  ;;  %v1611_v57 = vsel %vm898_vm11, %v3252_v19, 0.0  ;;  %v1238_v41 = vmul.f32 %v2305_v49, %v2305_v49 }
 0x33c   : > { %v1184_v44 = vpop.f32.mrf.mxu1  ;;  %v915_v17 = vadd.f32 %v914_v5, %v913_v11  ;;  %v1245_v28 = vadd.f32 %v1244_v21, %v1243_v7  ;;  %v1612_v10 = vadd.f32 %v1611_v57, %v1610_v1  ;;  %v1218_v25 = vsel %vm898_vm11, %v2305_v49, 0.0 }
 0x33d   : > { %v1641_v51 = vsel %vm898_vm11, %v1628_v14, 0.0  ;;  %v1216_v38 = vsel %vm898_vm11, %v1184_v44, 0.0  ;;  %v1237_v55 = vmul.f32 %v1184_v44, %v1184_v44  ;;  %v944_v18 = vrot.slane %v943_v23, 4 }
 0x33e   : > { %v2308_v24 = vpop.f32.mrf.mxu1  ;;  %v1217_v30 = vadd.f32 %v1216_v38, %v1215_v33  ;;  %v1642_v63 = vadd.f32 %v1641_v51, %v1640_v6  ;;  %v1613_v43 = vsel %vm898_vm11, %v3246_v52, 0.0  ;;  %v1248_v29 = vsel %vm898_vm11, %v1238_v41, 0.0 }
 0x33f   : > { %v1246_v12 = vsel %vm898_vm11, %v1237_v55, 0.0  ;;  %v916_v8 = vrot.slane %v915_v17, 2  ;;  %v1643_v16 = vsel %vm898_vm11, %v1629_v62, 0.0  ;;  %v1614_v27 = vadd.f32 %v1613_v43, %v1612_v10 }
 0x340   : > { %v1194_v36 = vpop.f32.mrf.mxu1  ;;  %v1247_v0 = vadd.f32 %v1246_v12, %v1245_v28  ;;  %v1219_v31 = vadd.f32 %v1218_v25, %v1217_v30  ;;  %v3276_v58 = vadd.f32 %v1643_v16, %v1642_v63  ;;  %v1240_v15 = vmul.f32 %v2308_v24, %v2308_v24 }
 0x341   : > { %v2342_v54 = vpop.f32.mrf.mxu0  ;;  %v1220_v40 = vsel %vm898_vm11, %v1194_v36, 0.0  ;;  %v1239_v11 = vmul.f32 %v1194_v36, %v1194_v36  ;;  %v3280_v56 = vadd.f32 %v944_v18, %v943_v23  ;;  %v1222_v53 = vsel %vm898_vm11, %v2308_v24, 0.0 }
 0x342   : > { %1976 = vrot.lane.b32.xlu1 %v2342_v54, %s2390_s29  ;;  %v2311_v48 = vpop.f32.mrf.mxu1  ;;  %v1249_v37 = vadd.f32 %v1248_v29, %v1247_v0  ;;  %v1221_v39 = vadd.f32 %v1220_v40, %v1219_v31  ;;  %v3283_v5 = vadd.f32 %v916_v8, %v915_v17  ;;  %v1937_v14 = vmul.f32 %v2342_v54, %v2342_v54 }
 0x343   : > { %v1875_v3 = vpop.f32.mrf.mxu0  ;;  %v1250_v9 = vsel %vm898_vm11, %v1239_v11, 0.0  ;;  %v1615_v33 = vrot.slane %v1614_v27, 4  ;;  %v1645_v7 = vrot.slane %v3276_v58, 4  ;;  %v1242_v38 = vmul.f32 %v2311_v48, %v2311_v48 }
 0x344   : > { %1974 = vrot.lane.b32.xlu0 %v1875_v3, %s2390_s29  ;;  %v1204_v32 = vpop.f32.mrf.mxu1  ;;  %v1251_v4 = vadd.f32 %v1250_v9, %v1249_v37  ;;  %v1936_v62 = vmul.f32 %v1875_v3, %v1875_v3  ;;  %v1914_v1 = vsel %vm898_vm11, %v1875_v3, 0.0  ;;  %v1223_v57 = vadd.f32 %v1222_v53, %v1221_v39 }
 0x345   : > { %v1224_v55 = vsel %vm898_vm11, %v1204_v32, 0.0  ;;  %v1241_v23 = vmul.f32 %v1204_v32, %v1204_v32  ;;  %v1915_v21 = vsel %vm898_vm11, %v2342_v54, 0.0  ;;  %v1226_v6 = vsel %vm898_vm11, %v2311_v48, 0.0 }
 0x346   : > { %1279 = vrot.lane.b32.xlu1 %v2305_v49, %s2390_s29  ;;  %v2345_v59 = vpop.f32.mrf.mxu1  ;;  %v1252_v49 = vsel %vm898_vm11, %v1240_v15, 0.0  ;;  %v1225_v41 = vadd.f32 %v1224_v55, %v1223_v57  ;;  %v1945_v28 = vsel %vm898_vm11, %v1937_v14, 0.0  ;;  %v1916_v30 = vadd.f32 %v1915_v21, %v1914_v1 }
 0x347   : > { %v1253_v12 = vadd.f32 %v1252_v49, %v1251_v4  ;;  %v1254_v10 = vsel %vm898_vm11, %v1241_v23, 0.0  ;;  %v1939_v25 = vmul.f32 %v2345_v59, %v2345_v59  ;;  %v1256_v31 = vsel %vm898_vm11, %v1242_v38, 0.0 }
 0x348   : > { %1277 = vrot.lane.b32.xlu0 %v1184_v44, %s2390_s29  ;;  %v1885_v51 = vpop.f32.mrf.mxu1  ;;  %v1944_v44 = vsel %vm898_vm11, %v1936_v62, 0.0  ;;  %v1227_v63 = vadd.f32 %v1226_v6, %v1225_v41  ;;  %v1919_v3 = vsel %vm898_vm11, %v2345_v59, 0.0  ;;  %v1616_v15 = vadd.f32 %v1615_v33, %v1614_v27 }
 0x349   : > { %v1938_v0 = vmul.f32 %v1885_v51, %v1885_v51  ;;  %v1946_v40 = vadd.f32 %v1945_v28, %v1944_v44  ;;  %v1255_v18 = vadd.f32 %v1254_v10, %v1253_v12  ;;  %v1949_v53 = vsel %vm898_vm11, %v1939_v25, 0.0 }
 0x34a   : > { %1283 = vrot.lane.b32.xlu1 %v2308_v24, %s2390_s29  ;;  %v2348_v17 = vpop.f32.mrf.mxu1  ;;  %v1917_v24 = vsel %vm898_vm11, %v1885_v51, 0.0  ;;  %v1228_v29 = vrot.slane %v1227_v63, 4  ;;  %v946_v49 = vrot.slane %v3280_v56, 2  ;;  %v1646_v38 = vadd.f32 %v1645_v7, %v3276_v58 }
 0x34b   : > { %v1918_v43 = vadd.f32 %v1917_v24, %v1916_v30  ;;  %v1947_v8 = vsel %vm898_vm11, %v1938_v0, 0.0  ;;  %v1257_v16 = vadd.f32 %v1256_v31, %v1255_v18  ;;  %v1941_v4 = vmul.f32 %v2348_v17, %v2348_v17 }
 0x34c   : > { %1281 = vrot.lane.b32.xlu0 %v1194_v36, %s2390_s29  ;;  %v1895_v54 = vpop.f32.mrf.mxu1  ;;  %v1948_v11 = vadd.f32 %v1947_v8, %v1946_v40  ;;  %v1229_v9 = vadd.f32 %v1228_v29, %v1227_v63  ;;  %v1617_v30 = vrot.slane %v1616_v15, 2  ;;  %v947_v7 = vadd.f32 %v946_v49, %v3280_v56 }
 0x34d   : > { %v1921_v36 = vsel %vm898_vm11, %v1895_v54, 0.0  ;;  %v1920_v37 = vadd.f32 %v1919_v3, %v1918_v43  ;;  %v1940_v39 = vmul.f32 %v1895_v54, %v1895_v54  ;;  %v1953_v41 = vsel %vm898_vm11, %v1941_v4, 0.0 }
 0x34e   : > { %1287 = vrot.lane.b32.xlu1 %v2311_v48, %s2390_s29  ;;  %v1258_v48 = vrot.slane %v1257_v16, 4  ;;  %v1950_v1 = vadd.f32 %v1949_v53, %v1948_v11  ;;  %v1230_v55 = vrot.slane %v1229_v9, 2  ;;  %v1647_v63 = vrot.slane %v1646_v38, 2 }
 0x34f   : > { %v1922_v62 = vadd.f32 %v1921_v36, %v1920_v37  ;;  %v1951_v57 = vsel %vm898_vm11, %v1940_v39, 0.0  ;;  %v918_v18 = vrot.slane %v3283_v5, 1  ;;  %v1618_v29 = vadd.f32 %v1617_v30, %v1616_v15 }
 0x350   : > { %1285 = vrot.lane.b32.xlu0 %v1204_v32, %s2390_s29  ;;  %v2351_v14 = vpop.f32.mrf.mxu1  ;;  %v1923_v32 = vsel %vm898_vm11, %v2348_v17, 0.0  ;;  %v1259_v33 = vadd.f32 %v1258_v48, %v1257_v16  ;;  %v1952_v23 = vadd.f32 %v1951_v57, %v1950_v1  ;;  %v1231_v44 = vadd.f32 %v1230_v55, %v1229_v9 }
 0x351   : > { %v1924_v21 = vadd.f32 %v1923_v32, %v1922_v62  ;;  %v1943_v28 = vmul.f32 %v2351_v14, %v2351_v14  ;;  %v1927_v25 = vsel %vm898_vm11, %v2351_v14, 0.0  ;;  %v948_v56 = vrot.slane %v947_v7, 1 }
 0x352   : > { %1980 = vrot.lane.b32.xlu1 %v2345_v59, %s2390_s29  ;;  %v1905_v27 = vpop.f32.mrf.mxu1  ;;  %v1260_v12 = vrot.slane %v1259_v33, 2  ;;  %v1954_v58 = vadd.f32 %v1953_v41, %v1952_v23  ;;  %v1232_v0 = vrot.slane %v1231_v44, 1  ;;  %v1648_v36 = vadd.f32 %v1647_v63, %v1646_v38 }
 0x353   : > { %v1925_v6 = vsel %vm898_vm11, %v1905_v27, 0.0  ;;  %v1942_v59 = vmul.f32 %v1905_v27, %v1905_v27  ;;  %v1957_v43 = vsel %vm898_vm11, %v1943_v28, 0.0  ;;  %v1619_v39 = vrot.slane %v1618_v29, 1 }
 0x354   : > { %1978 = vrot.lane.b32.xlu0 %v1885_v51, %s2390_s29  ;;  %v1926_v10 = vadd.f32 %v1925_v6, %v1924_v21  ;;  %v1261_v51 = vadd.f32 %v1260_v12, %v1259_v33  ;;  %v1233_v16 = vadd.f32 %v1232_v0, %v1231_v44  ;;  %v949_v15 = vadd.f32 %v948_v56, %v947_v7 }
 0x355   : > { %v1955_v24 = vsel %vm898_vm11, %v1942_v59, 0.0  ;;  %v1649_v48 = vrot.slane %v1648_v36, 1 }
 0x356   : > { %1984 = vrot.lane.b32.xlu1 %v2348_v17, %s2390_s29  ;;  %v1928_v31 = vadd.f32 %v1927_v25, %v1926_v10  ;;  %v1956_v40 = vadd.f32 %v1955_v24, %v1954_v58  ;;  %v1262_v3 = vrot.slane %v1261_v51, 1 }
 0x357   : > { %v1650_v32 = vadd.f32 %v1649_v48, %v1648_v36 }
 0x358   : > { %1982 = vrot.lane.b32.xlu0 %v1895_v54, %s2390_s29  ;;  %v1929_v17 = vrot.slane %v1928_v31, 4  ;;  %v1958_v8 = vadd.f32 %v1957_v43, %v1956_v40  ;;  %v919_v54 = vadd.f32 %v918_v18, %v3283_v5  ;;  %v1263_v9 = vadd.f32 %v1262_v3, %v1261_v51 }
 0x35a   : > { %1988 = vrot.lane.b32.xlu1 %v2351_v14, %s2390_s29  ;;  %v1930_v11 = vadd.f32 %v1929_v17, %v1928_v31  ;;  %v1959_v37 = vrot.slane %v1958_v8, 4  ;;  %v1234_v62 = vadd.f32 %v1233_v16, %v919_v54  ;;  %v1620_v14 = vadd.f32 %v1619_v39, %v1618_v29 }
 0x35b   : > { %v1264_v49 = vadd.f32 %v1263_v9, %v949_v15 }
 0x35c   : > { %1986 = vrot.lane.b32.xlu0 %v1905_v27, %s2390_s29  ;;  %v1931_v53 = vrot.slane %v1930_v11, 2  ;;  %v1960_v4 = vadd.f32 %v1959_v37, %v1958_v8  ;;  %v1621_v33 = vadd.f32 %v1620_v14, %v1234_v62 }
 0x35d   : > { %v1651_v5 = vadd.f32 %v1650_v32, %v1264_v49 }
 0x35e   : > { %v1932_v1 = vadd.f32 %v1931_v53, %v1930_v11  ;;  %v1961_v57 = vrot.slane %v1960_v4, 2 }
 0x360   : > { %v1933_v38 = vrot.slane %v1932_v1, 1  ;;  %v1962_v55 = vadd.f32 %v1961_v57, %v1960_v4 }
 0x362   : > { %v1934_v27 = vadd.f32 %v1933_v38, %v1932_v1  ;;  %v1963_v23 = vrot.slane %v1962_v55, 1 }
 0x364   : > { %v1935_v21 = vadd.f32 %v1934_v27, %v1621_v33  ;;  %v1964_v6 = vadd.f32 %v1963_v23, %v1962_v55 }
 0x366   : > { %v1965_v44 = vadd.f32 %v1964_v6, %v1651_v5  ;;  %2016 = vst.msk [vmem:[%s211_s7] sm:$0x1] %vm2015_vm12, %v1935_v21 }
 0x368   : > { %2017 = vst.msk [vmem:[%s211_s7 + $0x1] sm:$0x1] %vm2015_vm12, %v1965_v44 }
 0x3a9   : > { %v1276_v41 = vpop.permute.xlu1 %1275 }
 0x3aa   : > { %v1298_v28 = vsel %vm898_vm11, %v3151_v2, %v1276_v41 }
 0x3ab   : > { %1306 = vst.msk [vmem:[%s3331_s12 + $0x10] sm:$0xff] %vm567_vm4, %v1298_v28  ;;  %v1274_v59 = vpop.permute.xlu0 %1273 }
 0x3ac   : > { %v1297_v30 = vsel %vm898_vm11, %v3153_v26, %v1274_v59 }
 0x3ad   : > { %1305 = vst.msk [vmem:[%s3331_s12] sm:$0xff] %vm567_vm4, %v1297_v30 }
 0x3b4   : > { %v1977_v12 = vpop.permute.xlu1 %1976 }
 0x3b5   : > { %v1999_v10 = vsel %vm898_vm11, %v3157_v60, %v1977_v12 }
 0x3b6   : > { %2170 = vst.msk [vmem:[%s3331_s12 + $0x18] sm:$0xff] %vm567_vm4, %v1999_v10  ;;  %v1975_v58 = vpop.permute.xlu0 %1974 }
 0x3b7   : > { %v1998_v2 = vsel %vm898_vm11, %v3161_v61, %v1975_v58 }
 0x3b8   : > { %2169 = vst.msk [vmem:[%s3331_s12 + $0x8] sm:$0xff] %vm567_vm4, %v1998_v2  ;;  %v1280_v7 = vpop.permute.xlu1 %1279 }
 0x3b9   : > { %v1300_v26 = vsel %vm898_vm11, %v3155_v42, %v1280_v7 }
 0x3ba   : > { %1308 = vst.msk [vmem:[%s3331_s12 + $0x30] sm:$0xff] %vm567_vm4, %v1300_v26  ;;  %v1278_v63 = vpop.permute.xlu0 %1277 }
 0x3bb   : > { %v1299_v60 = vsel %vm898_vm11, %v3159_v50, %v1278_v63 }
 0x3bc   : > { %1307 = vst.msk [vmem:[%s3331_s12 + $0x20] sm:$0xff] %vm567_vm4, %v1299_v60  ;;  %v1284_v25 = vpop.permute.xlu1 %1283 }
 0x3bd   : > { %v1302_v61 = vsel %vm898_vm11, %v3167_v34, %v1284_v25 }
 0x3be   : > { %1310 = vst.msk [vmem:[%s3331_s12 + $0x50] sm:$0xff] %vm567_vm4, %v1302_v61  ;;  %v1282_v24 = vpop.permute.xlu0 %1281 }
 0x3bf   : > { %v1301_v42 = vsel %vm898_vm11, %v3180_v46, %v1282_v24 }
 0x3c0   : > { %1309 = vst.msk [vmem:[%s3331_s12 + $0x40] sm:$0xff] %vm567_vm4, %v1301_v42  ;;  %v1288_v0 = vpop.permute.xlu1 %1287 }
 0x3c1   : > { %v1304_v50 = vsel %vm898_vm11, %v3217_v20, %v1288_v0 }
 0x3c2   : > { %1312 = vst.msk [vmem:[%s3331_s12 + $0x70] sm:$0xff] %vm567_vm4, %v1304_v50  ;;  %v1286_v51 = vpop.permute.xlu0 %1285 }
 0x3c3   : > { %v1303_v34 = vsel %vm898_vm11, %v3226_v45, %v1286_v51 }
 0x3c4   : > { %1311 = vst.msk [vmem:[%s3331_s12 + $0x60] sm:$0xff] %vm567_vm4, %v1303_v34  ;;  %v1981_v31 = vpop.permute.xlu1 %1980 }
 0x3c5   : > { %v2001_v46 = vsel %vm898_vm11, %v3169_v47, %v1981_v31 }
 0x3c6   : > { %2172 = vst.msk [vmem:[%s3331_s12 + $0x38] sm:$0xff] %vm567_vm4, %v2001_v46  ;;  %v1979_v40 = vpop.permute.xlu0 %1978 }
 0x3c7   : > { %v2000_v20 = vsel %vm898_vm11, %v3182_v22, %v1979_v40 }
 0x3c8   : > { %2171 = vst.msk [vmem:[%s3331_s12 + $0x28] sm:$0xff] %vm567_vm4, %v2000_v20  ;;  %v1985_v18 = vpop.permute.xlu1 %1984 }
 0x3c9   : > { %v2003_v45 = vsel %vm898_vm11, %v3209_v35, %v1985_v18 }
 0x3ca   : > { %2174 = vst.msk [vmem:[%s3331_s12 + $0x58] sm:$0xff] %vm567_vm4, %v2003_v45  ;;  %v1983_v43 = vpop.permute.xlu0 %1982 }
 0x3cb   : > { %v2002_v29 = vsel %vm898_vm11, %v3219_v13, %v1983_v43 }
 0x3cc   : > { %2173 = vst.msk [vmem:[%s3331_s12 + $0x48] sm:$0xff] %vm567_vm4, %v2002_v29  ;;  %v1989_v47 = vpop.permute.xlu1 %1988 }
 0x3cd   : > { %v2005_v3 = vsel %vm898_vm11, %v3246_v52, %v1989_v47 }
 0x3ce   : > { %2176 = vst.msk [vmem:[%s3331_s12 + $0x78] sm:$0xff] %vm567_vm4, %v2005_v3  ;;  %v1987_v22 = vpop.permute.xlu0 %1986 }
 0x3cf   : > { %v2004_v17 = vsel %vm898_vm11, %v3252_v19, %v1987_v22 }
 0x3d0   : > { %2175 = vst.msk [vmem:[%s3331_s12 + $0x68] sm:$0xff] %vm567_vm4, %v2004_v17 }
 0x3d1 PF: > { %s15_s15 = sadd.s32 1, %s2382_s15  }
 0x3d2   : > { %p12_p5 = scmp.ge.s32.totalorder %s15_s15, 4  }
 0x3d4   :  { %14 = sbr.rel (!%p12_p5) target bundleno = 1 (0x1), region = 81 }

</bundles_post_ra>
